<compile_context>
chip_gen: v7x
topology: tpu7x:2x2x1
jax: 0.10.0
libtpu: 0.0.40
codegen_flags: <defaults>
</compile_context>

<pallas_src>
import functools

import jax
import jax.numpy as jnp
from jax import lax
from jax.experimental import pallas as pl
from jax.experimental.pallas import tpu as pltpu


def encoder_layer_kernel(x_ref,
                         wq_ref, wk_ref, wv_ref, bq_ref, bk_ref, bv_ref,
                         wo_ref, bo_ref,
                         g1_ref, be1_ref,
                         w1_ref, b1_ref, w2_ref, b2_ref,
                         g2_ref, be2_ref,
                         o_ref,
                         *, num_heads, block_b, seq_len):
    x = x_ref[...]                                   # (Bt*S, D) float32
    n, d_model = x.shape
    xb = x.astype(jnp.bfloat16)

    # --- multi-head self attention (heads unrolled, batch handled as einsum batch dim) ---
    attn = jnp.zeros((n, d_model), jnp.float32)
    for h in range(num_heads):                       # static unrolled loop (num_heads small)
        # head-major weights: wq_ref[h] is (D, hd); scale already folded into wq/bq.
        q = jnp.dot(xb, wq_ref[h], preferred_element_type=jnp.float32) + bq_ref[h]
        k = jnp.dot(xb, wk_ref[h], preferred_element_type=jnp.float32) + bk_ref[h]
        v = jnp.dot(xb, wv_ref[h], preferred_element_type=jnp.float32) + bv_ref[h]
        qb = q.reshape(block_b, seq_len, -1).astype(jnp.bfloat16)   # (Bt, S, hd)
        kb = k.reshape(block_b, seq_len, -1).astype(jnp.bfloat16)
        vb = v.reshape(block_b, seq_len, -1).astype(jnp.bfloat16)

        s = jnp.einsum("bqd,bkd->bqk", qb, kb,
                       preferred_element_type=jnp.float32)          # (Bt, S, S) f32
        s = s - jnp.max(s, axis=-1, keepdims=True)
        p = jnp.exp(s)
        p = p * pl.reciprocal(jnp.sum(p, axis=-1, keepdims=True), approx=True)

        o_h = jnp.einsum("bqk,bkd->bqd", p.astype(jnp.bfloat16), vb,
                         preferred_element_type=jnp.float32)        # (Bt, S, hd)
        # fold head output directly into the output projection (wo_ref[h]: (hd, D))
        attn = attn + jnp.dot(o_h.reshape(n, -1).astype(jnp.bfloat16), wo_ref[h],
                              preferred_element_type=jnp.float32)
    attn = attn + bo_ref[...]

    def layer_norm(y, g, b):
        mu = jnp.mean(y, axis=-1, keepdims=True)
        var = jnp.mean((y - mu) ** 2, axis=-1, keepdims=True)
        return (y - mu) * lax.rsqrt(var + 1e-6) * g + b             # eps matches module (1e-6)

    out1 = layer_norm(x + attn, g1_ref[...], be1_ref[...])          # (Bt*S, D) f32

    # --- position-wise CNN (Linear -> ReLU -> Linear) ---
    h1 = jnp.dot(out1.astype(jnp.bfloat16), w1_ref[...],
                 preferred_element_type=jnp.float32) + b1_ref[...]
    h1 = jnp.maximum(h1, 0.0)
    ffn = jnp.dot(h1.astype(jnp.bfloat16), w2_ref[...],
                  preferred_element_type=jnp.float32) + b2_ref[...]

    out2 = layer_norm(out1 + ffn, g2_ref[...], be2_ref[...])
    o_ref[...] = out2


def encoder_layer(x, params, *, num_heads, block_b=None):
    B, S, D = x.shape
    H = params["w1"].shape[1]                        # conv_hidden_dim (== D in module)
    nh = num_heads
    hd = D // nh
    scale = 1.0 / (hd ** 0.5)

    if block_b is None:
        # aim for >=128 rows per grid step to amortize per-step overhead / fill the MXU
        target = max(1, 128 // S)
        block_b = 1
        for cand in range(min(B, target), 0, -1):
            if B % cand == 0:
                block_b = cand
                break
    assert B % block_b == 0
    n_rows = block_b * S

    f32, bf16 = jnp.float32, jnp.bfloat16

    # Head-major weights in bf16 for native MXU throughput; 1/sqrt(hd) folded into wq/bq.
    wq3 = (params["wq"] * scale).reshape(D, nh, hd).transpose(1, 0, 2).astype(bf16)
    wk3 = params["wk"].reshape(D, nh, hd).transpose(1, 0, 2).astype(bf16)
    wv3 = params["wv"].reshape(D, nh, hd).transpose(1, 0, 2).astype(bf16)
    bq3 = (params["bq"] * scale).reshape(nh, 1, hd).astype(f32)
    bk3 = params["bk"].reshape(nh, 1, hd).astype(f32)
    bv3 = params["bv"].reshape(nh, 1, hd).astype(f32)
    wo3 = params["wo"].reshape(nh, hd, D).astype(bf16)

    x2d = x.reshape(B * S, D).astype(f32)            # free wrapper-side reshape

    row_spec = pl.BlockSpec((n_rows, D), lambda b: (b, 0))
    w_head = pl.BlockSpec((nh, D, hd), lambda b: (0, 0, 0))
    b_head = pl.BlockSpec((nh, 1, hd), lambda b: (0, 0, 0))
    wo_spec = pl.BlockSpec((nh, hd, D), lambda b: (0, 0, 0))
    vec_d = pl.BlockSpec((1, D), lambda b: (0, 0))
    vec_h = pl.BlockSpec((1, H), lambda b: (0, 0))
    mat_dh = pl.BlockSpec((D, H), lambda b: (0, 0))
    mat_hd = pl.BlockSpec((H, D), lambda b: (0, 0))

    in_specs = [
        row_spec,                                    # x (flattened rows)
        w_head, w_head, w_head,                      # wq wk wv (head-major)
        b_head, b_head, b_head,                      # bq bk bv (head-major)
        wo_spec, vec_d,                              # wo (head-major), bo
        vec_d, vec_d,                                # ln1 gamma/beta
        mat_dh, vec_h,                               # w1 b1
        mat_hd, vec_d,                               # w2 b2
        vec_d, vec_d,                                # ln2 gamma/beta
    ]

    kernel = functools.partial(encoder_layer_kernel, num_heads=nh,
                               block_b=block_b, seq_len=S)
    out2d = pl.pallas_call(
        kernel,
        out_shape=jax.ShapeDtypeStruct((B * S, D), f32),
        grid_spec=pltpu.PrefetchScalarGridSpec(
            num_scalar_prefetch=0,
            grid=(B // block_b,),
            in_specs=in_specs,
            out_specs=row_spec,
        ),
        compiler_params=pltpu.CompilerParams(
            dimension_semantics=("parallel",),
            vmem_limit_bytes=64 * 1024 * 1024,
        ),
    )(
        x2d,
        wq3, wk3, wv3, bq3, bk3, bv3,
        wo3, params["bo"].astype(f32),
        params["ln1_g"].astype(f32), params["ln1_b"].astype(f32),
        params["w1"].astype(bf16), params["b1"].astype(f32),
        params["w2"].astype(bf16), params["b2"].astype(f32),
        params["ln2_g"].astype(f32), params["ln2_b"].astype(f32),
    )
    return out2d.reshape(B, S, D)


def reference_encoder_layer(x, params, *, num_heads):
    B, S, D = x.shape
    hd = D // num_heads

    def ln(y, g, b):
        mu = jnp.mean(y, axis=-1, keepdims=True)
        var = jnp.mean((y - mu) ** 2, axis=-1, keepdims=True)
        return (y - mu) / jnp.sqrt(var + 1e-6) * g + b

    q = x @ params["wq"] + params["bq"]
    k = x @ params["wk"] + params["bk"]
    v = x @ params["wv"] + params["bv"]
    q = q.reshape(B, S, num_heads, hd).transpose(0, 2, 1, 3)
    k = k.reshape(B, S, num_heads, hd).transpose(0, 2, 1, 3)
    v = v.reshape(B, S, num_heads, hd).transpose(0, 2, 1, 3)
    s = jnp.einsum("bhqd,bhkd->bhqk", q, k) / jnp.sqrt(hd)
    p = jax.nn.softmax(s, axis=-1)
    o = jnp.einsum("bhqk,bhkd->bhqd", p, v).transpose(0, 2, 1, 3).reshape(B, S, D)
    attn = o @ params["wo"] + params["bo"]
    out1 = ln(x + attn, params["ln1_g"], params["ln1_b"])
    ffn = jnp.maximum(out1 @ params["w1"] + params["b1"], 0.0) @ params["w2"] + params["b2"]
    return ln(out1 + ffn, params["ln2_g"], params["ln2_b"])


def make_params(key, d_model, num_heads):
    conv_hidden_dim = d_model  # module overrides conv_hidden_dim = d_model
    ks = jax.random.split(key, 8)
    sd = 0.1
    return {
        "wq": jax.random.normal(ks[0], (d_model, d_model), jnp.float32) * sd,
        "wk": jax.random.normal(ks[1], (d_model, d_model), jnp.float32) * sd,
        "wv": jax.random.normal(ks[2], (d_model, d_model), jnp.float32) * sd,
        "bq": jnp.full((1, d_model), 0.01, jnp.float32),
        "bk": jnp.full((1, d_model), -0.01, jnp.float32),
        "bv": jnp.full((1, d_model), 0.02, jnp.float32),
        "wo": jax.random.normal(ks[3], (d_model, d_model), jnp.float32) * sd,
        "bo": jnp.full((1, d_model), 0.005, jnp.float32),
        "ln1_g": jnp.ones((1, d_model), jnp.float32),
        "ln1_b": jnp.zeros((1, d_model), jnp.float32),
        "w1": jax.random.normal(ks[4], (d_model, conv_hidden_dim), jnp.float32) * sd,
        "b1": jnp.full((1, conv_hidden_dim), 0.03, jnp.float32),
        "w2": jax.random.normal(ks[5], (conv_hidden_dim, d_model), jnp.float32) * sd,
        "b2": jnp.full((1, d_model), -0.02, jnp.float32),
        "ln2_g": jnp.ones((1, d_model), jnp.float32),
        "ln2_b": jnp.zeros((1, d_model), jnp.float32),
    }


if __name__ == "__main__":
    B, S, D, NH = 2, 8, 32, 4
    key = jax.random.PRNGKey(0)
    kx, kp = jax.random.split(key)
    x = jax.random.normal(kx, (B, S, D), jnp.float32)
    params = make_params(kp, D, NH)

    out = encoder_layer(x, params, num_heads=NH)
    out = jax.block_until_ready(out)

    ref = reference_encoder_layer(x, params, num_heads=NH)
    assert out.shape == (B, S, D)
    # tolerance loosened vs. pure-f32 reference because matmul inputs are bf16 (f32 accumulation)
    assert jnp.allclose(out, ref, atol=3e-2, rtol=3e-2), "mismatch vs JAX reference"
    print("KERNEL_OK")
</pallas_src>

<mosaic_0001>
module attributes {stable_mosaic.version = 11 : i64} {
  func.func @encoder_layer_kernel(%arg0: i32, %arg1: memref<16x32xf32, #tpu.memory_space<vmem>>, %arg2: memref<4x32x8xbf16, #tpu.memory_space<vmem>>, %arg3: memref<4x32x8xbf16, #tpu.memory_space<vmem>>, %arg4: memref<4x32x8xbf16, #tpu.memory_space<vmem>>, %arg5: memref<4x1x8xf32, #tpu.memory_space<vmem>>, %arg6: memref<4x1x8xf32, #tpu.memory_space<vmem>>, %arg7: memref<4x1x8xf32, #tpu.memory_space<vmem>>, %arg8: memref<4x8x32xbf16, #tpu.memory_space<vmem>>, %arg9: memref<1x32xf32, #tpu.memory_space<vmem>>, %arg10: memref<1x32xf32, #tpu.memory_space<vmem>>, %arg11: memref<1x32xf32, #tpu.memory_space<vmem>>, %arg12: memref<32x32xbf16, #tpu.memory_space<vmem>>, %arg13: memref<1x32xf32, #tpu.memory_space<vmem>>, %arg14: memref<32x32xbf16, #tpu.memory_space<vmem>>, %arg15: memref<1x32xf32, #tpu.memory_space<vmem>>, %arg16: memref<1x32xf32, #tpu.memory_space<vmem>>, %arg17: memref<1x32xf32, #tpu.memory_space<vmem>>, %arg18: memref<16x32xf32, #tpu.memory_space<vmem>>) attributes {dimension_semantics = [#tpu.dimension_semantics<parallel>], iteration_bounds = array<i64: 1>, scalar_prefetch = 0 : i64, scratch_operands = 0 : i64, tpu.core_type = #tpu.core_type<tc>, window_params = [{transform_indices = @transform_0, window_bounds = array<i64: 16, 32>}, {pipeline_mode = #tpu.pipeline_mode<synchronous>, transform_indices = @transform_1, window_bounds = array<i64: 4, 32, 8>}, {pipeline_mode = #tpu.pipeline_mode<synchronous>, transform_indices = @transform_2, window_bounds = array<i64: 4, 32, 8>}, {pipeline_mode = #tpu.pipeline_mode<synchronous>, transform_indices = @transform_3, window_bounds = array<i64: 4, 32, 8>}, {pipeline_mode = #tpu.pipeline_mode<synchronous>, transform_indices = @transform_4, window_bounds = array<i64: 4, 1, 8>}, {pipeline_mode = #tpu.pipeline_mode<synchronous>, transform_indices = @transform_5, window_bounds = array<i64: 4, 1, 8>}, {pipeline_mode = #tpu.pipeline_mode<synchronous>, transform_indices = @transform_6, window_bounds = array<i64: 4, 1, 8>}, {pipeline_mode = #tpu.pipeline_mode<synchronous>, transform_indices = @transform_7, window_bounds = array<i64: 4, 8, 32>}, {pipeline_mode = #tpu.pipeline_mode<synchronous>, transform_indices = @transform_8, window_bounds = array<i64: 1, 32>}, {pipeline_mode = #tpu.pipeline_mode<synchronous>, transform_indices = @transform_9, window_bounds = array<i64: 1, 32>}, {pipeline_mode = #tpu.pipeline_mode<synchronous>, transform_indices = @transform_10, window_bounds = array<i64: 1, 32>}, {pipeline_mode = #tpu.pipeline_mode<synchronous>, transform_indices = @transform_11, window_bounds = array<i64: 32, 32>}, {pipeline_mode = #tpu.pipeline_mode<synchronous>, transform_indices = @transform_12, window_bounds = array<i64: 1, 32>}, {pipeline_mode = #tpu.pipeline_mode<synchronous>, transform_indices = @transform_13, window_bounds = array<i64: 32, 32>}, {pipeline_mode = #tpu.pipeline_mode<synchronous>, transform_indices = @transform_14, window_bounds = array<i64: 1, 32>}, {pipeline_mode = #tpu.pipeline_mode<synchronous>, transform_indices = @transform_15, window_bounds = array<i64: 1, 32>}, {pipeline_mode = #tpu.pipeline_mode<synchronous>, transform_indices = @transform_16, window_bounds = array<i64: 1, 32>}, {transform_indices = @transform_17, window_bounds = array<i64: 16, 32>}]} {
    %c0 = arith.constant 0 : index
    %c0_0 = arith.constant 0 : index
    %0 = vector.load %arg1[%c0, %c0_0] : memref<16x32xf32, #tpu.memory_space<vmem>>, vector<16x32xf32>
    %1 = arith.truncf %0 : vector<16x32xf32> to vector<16x32xbf16>
    %cst = arith.constant 0.000000e+00 : f32
    %2 = vector.broadcast %cst : f32 to vector<16x32xf32>
    %c0_1 = arith.constant 0 : index
    %c0_2 = arith.constant 0 : index
    %c0_3 = arith.constant 0 : index
    %3 = vector.load %arg2[%c0_1, %c0_2, %c0_3] : memref<4x32x8xbf16, #tpu.memory_space<vmem>>, vector<1x32x8xbf16>
    %4 = vector.shape_cast %3 : vector<1x32x8xbf16> to vector<32x8xbf16>
    %cst_4 = arith.constant dense<0.000000e+00> : vector<16x8xf32>
    %5 = tpu.matmul %1, %4, %cst_4 {dimension_numbers = #tpu.dot_dimension_numbers<[1], [0], [0], [1], [0, 0, 1, 1], [], []>} : vector<16x32xbf16>, vector<32x8xbf16>, vector<16x8xf32> -> vector<16x8xf32>
    %c0_5 = arith.constant 0 : index
    %c0_6 = arith.constant 0 : index
    %c0_7 = arith.constant 0 : index
    %6 = vector.load %arg5[%c0_5, %c0_6, %c0_7] : memref<4x1x8xf32, #tpu.memory_space<vmem>>, vector<1x1x8xf32>
    %7 = vector.shape_cast %6 : vector<1x1x8xf32> to vector<1x8xf32>
    %8 = vector.broadcast %7 : vector<1x8xf32> to vector<16x8xf32>
    %9 = arith.addf %5, %8 : vector<16x8xf32>
    %c0_8 = arith.constant 0 : index
    %c0_9 = arith.constant 0 : index
    %c0_10 = arith.constant 0 : index
    %10 = vector.load %arg3[%c0_8, %c0_9, %c0_10] : memref<4x32x8xbf16, #tpu.memory_space<vmem>>, vector<1x32x8xbf16>
    %11 = vector.shape_cast %10 : vector<1x32x8xbf16> to vector<32x8xbf16>
    %cst_11 = arith.constant dense<0.000000e+00> : vector<16x8xf32>
    %12 = tpu.matmul %1, %11, %cst_11 {dimension_numbers = #tpu.dot_dimension_numbers<[1], [0], [0], [1], [0, 0, 1, 1], [], []>} : vector<16x32xbf16>, vector<32x8xbf16>, vector<16x8xf32> -> vector<16x8xf32>
    %c0_12 = arith.constant 0 : index
    %c0_13 = arith.constant 0 : index
    %c0_14 = arith.constant 0 : index
    %13 = vector.load %arg6[%c0_12, %c0_13, %c0_14] : memref<4x1x8xf32, #tpu.memory_space<vmem>>, vector<1x1x8xf32>
    %14 = vector.shape_cast %13 : vector<1x1x8xf32> to vector<1x8xf32>
    %15 = vector.broadcast %14 : vector<1x8xf32> to vector<16x8xf32>
    %16 = arith.addf %12, %15 : vector<16x8xf32>
    %c0_15 = arith.constant 0 : index
    %c0_16 = arith.constant 0 : index
    %c0_17 = arith.constant 0 : index
    %17 = vector.load %arg4[%c0_15, %c0_16, %c0_17] : memref<4x32x8xbf16, #tpu.memory_space<vmem>>, vector<1x32x8xbf16>
    %18 = vector.shape_cast %17 : vector<1x32x8xbf16> to vector<32x8xbf16>
    %cst_18 = arith.constant dense<0.000000e+00> : vector<16x8xf32>
    %19 = tpu.matmul %1, %18, %cst_18 {dimension_numbers = #tpu.dot_dimension_numbers<[1], [0], [0], [1], [0, 0, 1, 1], [], []>} : vector<16x32xbf16>, vector<32x8xbf16>, vector<16x8xf32> -> vector<16x8xf32>
    %c0_19 = arith.constant 0 : index
    %c0_20 = arith.constant 0 : index
    %c0_21 = arith.constant 0 : index
    %20 = vector.load %arg7[%c0_19, %c0_20, %c0_21] : memref<4x1x8xf32, #tpu.memory_space<vmem>>, vector<1x1x8xf32>
    %21 = vector.shape_cast %20 : vector<1x1x8xf32> to vector<1x8xf32>
    %22 = vector.broadcast %21 : vector<1x8xf32> to vector<16x8xf32>
    %23 = arith.addf %19, %22 : vector<16x8xf32>
    %24 = vector.shape_cast %9 : vector<16x8xf32> to vector<2x8x8xf32>
    %25 = arith.truncf %24 : vector<2x8x8xf32> to vector<2x8x8xbf16>
    %26 = vector.shape_cast %16 : vector<16x8xf32> to vector<2x8x8xf32>
    %27 = arith.truncf %26 : vector<2x8x8xf32> to vector<2x8x8xbf16>
    %28 = vector.shape_cast %23 : vector<16x8xf32> to vector<2x8x8xf32>
    %29 = arith.truncf %28 : vector<2x8x8xf32> to vector<2x8x8xbf16>
    "tpu.trace_start"() <{level = 10 : i32, message = "bqd,bkd->bqk"}> : () -> ()
    %cst_22 = arith.constant dense<0.000000e+00> : vector<2x8x8xf32>
    %30 = tpu.matmul %25, %27, %cst_22 {dimension_numbers = #tpu.dot_dimension_numbers<[2], [2], [1], [1], [0, 0, 0, 1, 1, 1], [0], [0]>} : vector<2x8x8xbf16>, vector<2x8x8xbf16>, vector<2x8x8xf32> -> vector<2x8x8xf32>
    "tpu.trace_stop"() : () -> ()
    %cst_23 = arith.constant dense<0xFF800000> : vector<2x8xf32>
    %31 = vector.multi_reduction <maximumf>, %30, %cst_23 [2] : vector<2x8x8xf32> to vector<2x8xf32>
    %32 = vector.shape_cast %31 : vector<2x8xf32> to vector<2x8x1xf32>
    %33 = vector.broadcast %32 : vector<2x8x1xf32> to vector<2x8x8xf32>
    %34 = arith.subf %30, %33 : vector<2x8x8xf32>
    %35 = math.exp %34 : vector<2x8x8xf32>
    %cst_24 = arith.constant dense<0.000000e+00> : vector<2x8xf32>
    %36 = vector.multi_reduction <add>, %35, %cst_24 [2] : vector<2x8x8xf32> to vector<2x8xf32>
    %37 = vector.shape_cast %36 : vector<2x8xf32> to vector<2x8x1xf32>
    %38 = tpu.reciprocal %37 {approx = true} : vector<2x8x1xf32> -> vector<2x8x1xf32>
    %39 = vector.broadcast %38 : vector<2x8x1xf32> to vector<2x8x8xf32>
    %40 = arith.mulf %35, %39 : vector<2x8x8xf32>
    %41 = arith.truncf %40 : vector<2x8x8xf32> to vector<2x8x8xbf16>
    "tpu.trace_start"() <{level = 10 : i32, message = "bqk,bkd->bqd"}> : () -> ()
    %cst_25 = arith.constant dense<0.000000e+00> : vector<2x8x8xf32>
    %42 = tpu.matmul %41, %29, %cst_25 {dimension_numbers = #tpu.dot_dimension_numbers<[2], [1], [1], [2], [0, 0, 0, 1, 1, 2], [0], [0]>} : vector<2x8x8xbf16>, vector<2x8x8xbf16>, vector<2x8x8xf32> -> vector<2x8x8xf32>
    "tpu.trace_stop"() : () -> ()
    %43 = vector.shape_cast %42 : vector<2x8x8xf32> to vector<16x8xf32>
    %44 = arith.truncf %43 : vector<16x8xf32> to vector<16x8xbf16>
    %c0_26 = arith.constant 0 : index
    %c0_27 = arith.constant 0 : index
    %c0_28 = arith.constant 0 : index
    %45 = vector.load %arg8[%c0_26, %c0_27, %c0_28] : memref<4x8x32xbf16, #tpu.memory_space<vmem>>, vector<1x8x32xbf16>
    %46 = vector.shape_cast %45 : vector<1x8x32xbf16> to vector<8x32xbf16>
    %cst_29 = arith.constant dense<0.000000e+00> : vector<16x32xf32>
    %47 = tpu.matmul %44, %46, %cst_29 {dimension_numbers = #tpu.dot_dimension_numbers<[1], [0], [0], [1], [0, 0, 1, 1], [], []>} : vector<16x8xbf16>, vector<8x32xbf16>, vector<16x32xf32> -> vector<16x32xf32>
    %48 = arith.addf %2, %47 : vector<16x32xf32>
    %c1 = arith.constant 1 : index
    %c0_30 = arith.constant 0 : index
    %c0_31 = arith.constant 0 : index
    %49 = vector.load %arg2[%c1, %c0_30, %c0_31] : memref<4x32x8xbf16, #tpu.memory_space<vmem>>, vector<1x32x8xbf16>
    %50 = vector.shape_cast %49 : vector<1x32x8xbf16> to vector<32x8xbf16>
    %cst_32 = arith.constant dense<0.000000e+00> : vector<16x8xf32>
    %51 = tpu.matmul %1, %50, %cst_32 {dimension_numbers = #tpu.dot_dimension_numbers<[1], [0], [0], [1], [0, 0, 1, 1], [], []>} : vector<16x32xbf16>, vector<32x8xbf16>, vector<16x8xf32> -> vector<16x8xf32>
    %c1_33 = arith.constant 1 : index
    %c0_34 = arith.constant 0 : index
    %c0_35 = arith.constant 0 : index
    %52 = vector.load %arg5[%c1_33, %c0_34, %c0_35] : memref<4x1x8xf32, #tpu.memory_space<vmem>>, vector<1x1x8xf32>
    %53 = vector.shape_cast %52 : vector<1x1x8xf32> to vector<1x8xf32>
    %54 = vector.broadcast %53 : vector<1x8xf32> to vector<16x8xf32>
    %55 = arith.addf %51, %54 : vector<16x8xf32>
    %c1_36 = arith.constant 1 : index
    %c0_37 = arith.constant 0 : index
    %c0_38 = arith.constant 0 : index
    %56 = vector.load %arg3[%c1_36, %c0_37, %c0_38] : memref<4x32x8xbf16, #tpu.memory_space<vmem>>, vector<1x32x8xbf16>
    %57 = vector.shape_cast %56 : vector<1x32x8xbf16> to vector<32x8xbf16>
    %cst_39 = arith.constant dense<0.000000e+00> : vector<16x8xf32>
    %58 = tpu.matmul %1, %57, %cst_39 {dimension_numbers = #tpu.dot_dimension_numbers<[1], [0], [0], [1], [0, 0, 1, 1], [], []>} : vector<16x32xbf16>, vector<32x8xbf16>, vector<16x8xf32> -> vector<16x8xf32>
    %c1_40 = arith.constant 1 : index
    %c0_41 = arith.constant 0 : index
    %c0_42 = arith.constant 0 : index
    %59 = vector.load %arg6[%c1_40, %c0_41, %c0_42] : memref<4x1x8xf32, #tpu.memory_space<vmem>>, vector<1x1x8xf32>
    %60 = vector.shape_cast %59 : vector<1x1x8xf32> to vector<1x8xf32>
    %61 = vector.broadcast %60 : vector<1x8xf32> to vector<16x8xf32>
    %62 = arith.addf %58, %61 : vector<16x8xf32>
    %c1_43 = arith.constant 1 : index
    %c0_44 = arith.constant 0 : index
    %c0_45 = arith.constant 0 : index
    %63 = vector.load %arg4[%c1_43, %c0_44, %c0_45] : memref<4x32x8xbf16, #tpu.memory_space<vmem>>, vector<1x32x8xbf16>
    %64 = vector.shape_cast %63 : vector<1x32x8xbf16> to vector<32x8xbf16>
    %cst_46 = arith.constant dense<0.000000e+00> : vector<16x8xf32>
    %65 = tpu.matmul %1, %64, %cst_46 {dimension_numbers = #tpu.dot_dimension_numbers<[1], [0], [0], [1], [0, 0, 1, 1], [], []>} : vector<16x32xbf16>, vector<32x8xbf16>, vector<16x8xf32> -> vector<16x8xf32>
    %c1_47 = arith.constant 1 : index
    %c0_48 = arith.constant 0 : index
    %c0_49 = arith.constant 0 : index
    %66 = vector.load %arg7[%c1_47, %c0_48, %c0_49] : memref<4x1x8xf32, #tpu.memory_space<vmem>>, vector<1x1x8xf32>
    %67 = vector.shape_cast %66 : vector<1x1x8xf32> to vector<1x8xf32>
    %68 = vector.broadcast %67 : vector<1x8xf32> to vector<16x8xf32>
    %69 = arith.addf %65, %68 : vector<16x8xf32>
    %70 = vector.shape_cast %55 : vector<16x8xf32> to vector<2x8x8xf32>
    %71 = arith.truncf %70 : vector<2x8x8xf32> to vector<2x8x8xbf16>
    %72 = vector.shape_cast %62 : vector<16x8xf32> to vector<2x8x8xf32>
    %73 = arith.truncf %72 : vector<2x8x8xf32> to vector<2x8x8xbf16>
    %74 = vector.shape_cast %69 : vector<16x8xf32> to vector<2x8x8xf32>
    %75 = arith.truncf %74 : vector<2x8x8xf32> to vector<2x8x8xbf16>
    "tpu.trace_start"() <{level = 10 : i32, message = "bqd,bkd->bqk"}> : () -> ()
    %cst_50 = arith.constant dense<0.000000e+00> : vector<2x8x8xf32>
    %76 = tpu.matmul %71, %73, %cst_50 {dimension_numbers = #tpu.dot_dimension_numbers<[2], [2], [1], [1], [0, 0, 0, 1, 1, 1], [0], [0]>} : vector<2x8x8xbf16>, vector<2x8x8xbf16>, vector<2x8x8xf32> -> vector<2x8x8xf32>
    "tpu.trace_stop"() : () -> ()
    %cst_51 = arith.constant dense<0xFF800000> : vector<2x8xf32>
    %77 = vector.multi_reduction <maximumf>, %76, %cst_51 [2] : vector<2x8x8xf32> to vector<2x8xf32>
    %78 = vector.shape_cast %77 : vector<2x8xf32> to vector<2x8x1xf32>
    %79 = vector.broadcast %78 : vector<2x8x1xf32> to vector<2x8x8xf32>
    %80 = arith.subf %76, %79 : vector<2x8x8xf32>
    %81 = math.exp %80 : vector<2x8x8xf32>
    %cst_52 = arith.constant dense<0.000000e+00> : vector<2x8xf32>
    %82 = vector.multi_reduction <add>, %81, %cst_52 [2] : vector<2x8x8xf32> to vector<2x8xf32>
    %83 = vector.shape_cast %82 : vector<2x8xf32> to vector<2x8x1xf32>
    %84 = tpu.reciprocal %83 {approx = true} : vector<2x8x1xf32> -> vector<2x8x1xf32>
    %85 = vector.broadcast %84 : vector<2x8x1xf32> to vector<2x8x8xf32>
    %86 = arith.mulf %81, %85 : vector<2x8x8xf32>
    %87 = arith.truncf %86 : vector<2x8x8xf32> to vector<2x8x8xbf16>
    "tpu.trace_start"() <{level = 10 : i32, message = "bqk,bkd->bqd"}> : () -> ()
    %cst_53 = arith.constant dense<0.000000e+00> : vector<2x8x8xf32>
    %88 = tpu.matmul %87, %75, %cst_53 {dimension_numbers = #tpu.dot_dimension_numbers<[2], [1], [1], [2], [0, 0, 0, 1, 1, 2], [0], [0]>} : vector<2x8x8xbf16>, vector<2x8x8xbf16>, vector<2x8x8xf32> -> vector<2x8x8xf32>
    "tpu.trace_stop"() : () -> ()
    %89 = vector.shape_cast %88 : vector<2x8x8xf32> to vector<16x8xf32>
    %90 = arith.truncf %89 : vector<16x8xf32> to vector<16x8xbf16>
    %c1_54 = arith.constant 1 : index
    %c0_55 = arith.constant 0 : index
    %c0_56 = arith.constant 0 : index
    %91 = vector.load %arg8[%c1_54, %c0_55, %c0_56] : memref<4x8x32xbf16, #tpu.memory_space<vmem>>, vector<1x8x32xbf16>
    %92 = vector.shape_cast %91 : vector<1x8x32xbf16> to vector<8x32xbf16>
    %cst_57 = arith.constant dense<0.000000e+00> : vector<16x32xf32>
    %93 = tpu.matmul %90, %92, %cst_57 {dimension_numbers = #tpu.dot_dimension_numbers<[1], [0], [0], [1], [0, 0, 1, 1], [], []>} : vector<16x8xbf16>, vector<8x32xbf16>, vector<16x32xf32> -> vector<16x32xf32>
    %94 = arith.addf %48, %93 : vector<16x32xf32>
    %c2 = arith.constant 2 : index
    %c0_58 = arith.constant 0 : index
    %c0_59 = arith.constant 0 : index
    %95 = vector.load %arg2[%c2, %c0_58, %c0_59] : memref<4x32x8xbf16, #tpu.memory_space<vmem>>, vector<1x32x8xbf16>
    %96 = vector.shape_cast %95 : vector<1x32x8xbf16> to vector<32x8xbf16>
    %cst_60 = arith.constant dense<0.000000e+00> : vector<16x8xf32>
    %97 = tpu.matmul %1, %96, %cst_60 {dimension_numbers = #tpu.dot_dimension_numbers<[1], [0], [0], [1], [0, 0, 1, 1], [], []>} : vector<16x32xbf16>, vector<32x8xbf16>, vector<16x8xf32> -> vector<16x8xf32>
    %c2_61 = arith.constant 2 : index
    %c0_62 = arith.constant 0 : index
    %c0_63 = arith.constant 0 : index
    %98 = vector.load %arg5[%c2_61, %c0_62, %c0_63] : memref<4x1x8xf32, #tpu.memory_space<vmem>>, vector<1x1x8xf32>
    %99 = vector.shape_cast %98 : vector<1x1x8xf32> to vector<1x8xf32>
    %100 = vector.broadcast %99 : vector<1x8xf32> to vector<16x8xf32>
    %101 = arith.addf %97, %100 : vector<16x8xf32>
    %c2_64 = arith.constant 2 : index
    %c0_65 = arith.constant 0 : index
    %c0_66 = arith.constant 0 : index
    %102 = vector.load %arg3[%c2_64, %c0_65, %c0_66] : memref<4x32x8xbf16, #tpu.memory_space<vmem>>, vector<1x32x8xbf16>
    %103 = vector.shape_cast %102 : vector<1x32x8xbf16> to vector<32x8xbf16>
    %cst_67 = arith.constant dense<0.000000e+00> : vector<16x8xf32>
    %104 = tpu.matmul %1, %103, %cst_67 {dimension_numbers = #tpu.dot_dimension_numbers<[1], [0], [0], [1], [0, 0, 1, 1], [], []>} : vector<16x32xbf16>, vector<32x8xbf16>, vector<16x8xf32> -> vector<16x8xf32>
    %c2_68 = arith.constant 2 : index
    %c0_69 = arith.constant 0 : index
    %c0_70 = arith.constant 0 : index
    %105 = vector.load %arg6[%c2_68, %c0_69, %c0_70] : memref<4x1x8xf32, #tpu.memory_space<vmem>>, vector<1x1x8xf32>
    %106 = vector.shape_cast %105 : vector<1x1x8xf32> to vector<1x8xf32>
    %107 = vector.broadcast %106 : vector<1x8xf32> to vector<16x8xf32>
    %108 = arith.addf %104, %107 : vector<16x8xf32>
    %c2_71 = arith.constant 2 : index
    %c0_72 = arith.constant 0 : index
    %c0_73 = arith.constant 0 : index
    %109 = vector.load %arg4[%c2_71, %c0_72, %c0_73] : memref<4x32x8xbf16, #tpu.memory_space<vmem>>, vector<1x32x8xbf16>
    %110 = vector.shape_cast %109 : vector<1x32x8xbf16> to vector<32x8xbf16>
    %cst_74 = arith.constant dense<0.000000e+00> : vector<16x8xf32>
    %111 = tpu.matmul %1, %110, %cst_74 {dimension_numbers = #tpu.dot_dimension_numbers<[1], [0], [0], [1], [0, 0, 1, 1], [], []>} : vector<16x32xbf16>, vector<32x8xbf16>, vector<16x8xf32> -> vector<16x8xf32>
    %c2_75 = arith.constant 2 : index
    %c0_76 = arith.constant 0 : index
    %c0_77 = arith.constant 0 : index
    %112 = vector.load %arg7[%c2_75, %c0_76, %c0_77] : memref<4x1x8xf32, #tpu.memory_space<vmem>>, vector<1x1x8xf32>
    %113 = vector.shape_cast %112 : vector<1x1x8xf32> to vector<1x8xf32>
    %114 = vector.broadcast %113 : vector<1x8xf32> to vector<16x8xf32>
    %115 = arith.addf %111, %114 : vector<16x8xf32>
    %116 = vector.shape_cast %101 : vector<16x8xf32> to vector<2x8x8xf32>
    %117 = arith.truncf %116 : vector<2x8x8xf32> to vector<2x8x8xbf16>
    %118 = vector.shape_cast %108 : vector<16x8xf32> to vector<2x8x8xf32>
    %119 = arith.truncf %118 : vector<2x8x8xf32> to vector<2x8x8xbf16>
    %120 = vector.shape_cast %115 : vector<16x8xf32> to vector<2x8x8xf32>
    %121 = arith.truncf %120 : vector<2x8x8xf32> to vector<2x8x8xbf16>
    "tpu.trace_start"() <{level = 10 : i32, message = "bqd,bkd->bqk"}> : () -> ()
    %cst_78 = arith.constant dense<0.000000e+00> : vector<2x8x8xf32>
    %122 = tpu.matmul %117, %119, %cst_78 {dimension_numbers = #tpu.dot_dimension_numbers<[2], [2], [1], [1], [0, 0, 0, 1, 1, 1], [0], [0]>} : vector<2x8x8xbf16>, vector<2x8x8xbf16>, vector<2x8x8xf32> -> vector<2x8x8xf32>
    "tpu.trace_stop"() : () -> ()
    %cst_79 = arith.constant dense<0xFF800000> : vector<2x8xf32>
    %123 = vector.multi_reduction <maximumf>, %122, %cst_79 [2] : vector<2x8x8xf32> to vector<2x8xf32>
    %124 = vector.shape_cast %123 : vector<2x8xf32> to vector<2x8x1xf32>
    %125 = vector.broadcast %124 : vector<2x8x1xf32> to vector<2x8x8xf32>
    %126 = arith.subf %122, %125 : vector<2x8x8xf32>
    %127 = math.exp %126 : vector<2x8x8xf32>
    %cst_80 = arith.constant dense<0.000000e+00> : vector<2x8xf32>
    %128 = vector.multi_reduction <add>, %127, %cst_80 [2] : vector<2x8x8xf32> to vector<2x8xf32>
    %129 = vector.shape_cast %128 : vector<2x8xf32> to vector<2x8x1xf32>
    %130 = tpu.reciprocal %129 {approx = true} : vector<2x8x1xf32> -> vector<2x8x1xf32>
    %131 = vector.broadcast %130 : vector<2x8x1xf32> to vector<2x8x8xf32>
    %132 = arith.mulf %127, %131 : vector<2x8x8xf32>
    %133 = arith.truncf %132 : vector<2x8x8xf32> to vector<2x8x8xbf16>
    "tpu.trace_start"() <{level = 10 : i32, message = "bqk,bkd->bqd"}> : () -> ()
    %cst_81 = arith.constant dense<0.000000e+00> : vector<2x8x8xf32>
    %134 = tpu.matmul %133, %121, %cst_81 {dimension_numbers = #tpu.dot_dimension_numbers<[2], [1], [1], [2], [0, 0, 0, 1, 1, 2], [0], [0]>} : vector<2x8x8xbf16>, vector<2x8x8xbf16>, vector<2x8x8xf32> -> vector<2x8x8xf32>
    "tpu.trace_stop"() : () -> ()
    %135 = vector.shape_cast %134 : vector<2x8x8xf32> to vector<16x8xf32>
    %136 = arith.truncf %135 : vector<16x8xf32> to vector<16x8xbf16>
    %c2_82 = arith.constant 2 : index
    %c0_83 = arith.constant 0 : index
    %c0_84 = arith.constant 0 : index
    %137 = vector.load %arg8[%c2_82, %c0_83, %c0_84] : memref<4x8x32xbf16, #tpu.memory_space<vmem>>, vector<1x8x32xbf16>
    %138 = vector.shape_cast %137 : vector<1x8x32xbf16> to vector<8x32xbf16>
    %cst_85 = arith.constant dense<0.000000e+00> : vector<16x32xf32>
    %139 = tpu.matmul %136, %138, %cst_85 {dimension_numbers = #tpu.dot_dimension_numbers<[1], [0], [0], [1], [0, 0, 1, 1], [], []>} : vector<16x8xbf16>, vector<8x32xbf16>, vector<16x32xf32> -> vector<16x32xf32>
    %140 = arith.addf %94, %139 : vector<16x32xf32>
    %c3 = arith.constant 3 : index
    %c0_86 = arith.constant 0 : index
    %c0_87 = arith.constant 0 : index
    %141 = vector.load %arg2[%c3, %c0_86, %c0_87] : memref<4x32x8xbf16, #tpu.memory_space<vmem>>, vector<1x32x8xbf16>
    %142 = vector.shape_cast %141 : vector<1x32x8xbf16> to vector<32x8xbf16>
    %cst_88 = arith.constant dense<0.000000e+00> : vector<16x8xf32>
    %143 = tpu.matmul %1, %142, %cst_88 {dimension_numbers = #tpu.dot_dimension_numbers<[1], [0], [0], [1], [0, 0, 1, 1], [], []>} : vector<16x32xbf16>, vector<32x8xbf16>, vector<16x8xf32> -> vector<16x8xf32>
    %c3_89 = arith.constant 3 : index
    %c0_90 = arith.constant 0 : index
    %c0_91 = arith.constant 0 : index
    %144 = vector.load %arg5[%c3_89, %c0_90, %c0_91] : memref<4x1x8xf32, #tpu.memory_space<vmem>>, vector<1x1x8xf32>
    %145 = vector.shape_cast %144 : vector<1x1x8xf32> to vector<1x8xf32>
    %146 = vector.broadcast %145 : vector<1x8xf32> to vector<16x8xf32>
    %147 = arith.addf %143, %146 : vector<16x8xf32>
    %c3_92 = arith.constant 3 : index
    %c0_93 = arith.constant 0 : index
    %c0_94 = arith.constant 0 : index
    %148 = vector.load %arg3[%c3_92, %c0_93, %c0_94] : memref<4x32x8xbf16, #tpu.memory_space<vmem>>, vector<1x32x8xbf16>
    %149 = vector.shape_cast %148 : vector<1x32x8xbf16> to vector<32x8xbf16>
    %cst_95 = arith.constant dense<0.000000e+00> : vector<16x8xf32>
    %150 = tpu.matmul %1, %149, %cst_95 {dimension_numbers = #tpu.dot_dimension_numbers<[1], [0], [0], [1], [0, 0, 1, 1], [], []>} : vector<16x32xbf16>, vector<32x8xbf16>, vector<16x8xf32> -> vector<16x8xf32>
    %c3_96 = arith.constant 3 : index
    %c0_97 = arith.constant 0 : index
    %c0_98 = arith.constant 0 : index
    %151 = vector.load %arg6[%c3_96, %c0_97, %c0_98] : memref<4x1x8xf32, #tpu.memory_space<vmem>>, vector<1x1x8xf32>
    %152 = vector.shape_cast %151 : vector<1x1x8xf32> to vector<1x8xf32>
    %153 = vector.broadcast %152 : vector<1x8xf32> to vector<16x8xf32>
    %154 = arith.addf %150, %153 : vector<16x8xf32>
    %c3_99 = arith.constant 3 : index
    %c0_100 = arith.constant 0 : index
    %c0_101 = arith.constant 0 : index
    %155 = vector.load %arg4[%c3_99, %c0_100, %c0_101] : memref<4x32x8xbf16, #tpu.memory_space<vmem>>, vector<1x32x8xbf16>
    %156 = vector.shape_cast %155 : vector<1x32x8xbf16> to vector<32x8xbf16>
    %cst_102 = arith.constant dense<0.000000e+00> : vector<16x8xf32>
    %157 = tpu.matmul %1, %156, %cst_102 {dimension_numbers = #tpu.dot_dimension_numbers<[1], [0], [0], [1], [0, 0, 1, 1], [], []>} : vector<16x32xbf16>, vector<32x8xbf16>, vector<16x8xf32> -> vector<16x8xf32>
    %c3_103 = arith.constant 3 : index
    %c0_104 = arith.constant 0 : index
    %c0_105 = arith.constant 0 : index
    %158 = vector.load %arg7[%c3_103, %c0_104, %c0_105] : memref<4x1x8xf32, #tpu.memory_space<vmem>>, vector<1x1x8xf32>
    %159 = vector.shape_cast %158 : vector<1x1x8xf32> to vector<1x8xf32>
    %160 = vector.broadcast %159 : vector<1x8xf32> to vector<16x8xf32>
    %161 = arith.addf %157, %160 : vector<16x8xf32>
    %162 = vector.shape_cast %147 : vector<16x8xf32> to vector<2x8x8xf32>
    %163 = arith.truncf %162 : vector<2x8x8xf32> to vector<2x8x8xbf16>
    %164 = vector.shape_cast %154 : vector<16x8xf32> to vector<2x8x8xf32>
    %165 = arith.truncf %164 : vector<2x8x8xf32> to vector<2x8x8xbf16>
    %166 = vector.shape_cast %161 : vector<16x8xf32> to vector<2x8x8xf32>
    %167 = arith.truncf %166 : vector<2x8x8xf32> to vector<2x8x8xbf16>
    "tpu.trace_start"() <{level = 10 : i32, message = "bqd,bkd->bqk"}> : () -> ()
    %cst_106 = arith.constant dense<0.000000e+00> : vector<2x8x8xf32>
    %168 = tpu.matmul %163, %165, %cst_106 {dimension_numbers = #tpu.dot_dimension_numbers<[2], [2], [1], [1], [0, 0, 0, 1, 1, 1], [0], [0]>} : vector<2x8x8xbf16>, vector<2x8x8xbf16>, vector<2x8x8xf32> -> vector<2x8x8xf32>
    "tpu.trace_stop"() : () -> ()
    %cst_107 = arith.constant dense<0xFF800000> : vector<2x8xf32>
    %169 = vector.multi_reduction <maximumf>, %168, %cst_107 [2] : vector<2x8x8xf32> to vector<2x8xf32>
    %170 = vector.shape_cast %169 : vector<2x8xf32> to vector<2x8x1xf32>
    %171 = vector.broadcast %170 : vector<2x8x1xf32> to vector<2x8x8xf32>
    %172 = arith.subf %168, %171 : vector<2x8x8xf32>
    %173 = math.exp %172 : vector<2x8x8xf32>
    %cst_108 = arith.constant dense<0.000000e+00> : vector<2x8xf32>
    %174 = vector.multi_reduction <add>, %173, %cst_108 [2] : vector<2x8x8xf32> to vector<2x8xf32>
    %175 = vector.shape_cast %174 : vector<2x8xf32> to vector<2x8x1xf32>
    %176 = tpu.reciprocal %175 {approx = true} : vector<2x8x1xf32> -> vector<2x8x1xf32>
    %177 = vector.broadcast %176 : vector<2x8x1xf32> to vector<2x8x8xf32>
    %178 = arith.mulf %173, %177 : vector<2x8x8xf32>
    %179 = arith.truncf %178 : vector<2x8x8xf32> to vector<2x8x8xbf16>
    "tpu.trace_start"() <{level = 10 : i32, message = "bqk,bkd->bqd"}> : () -> ()
    %cst_109 = arith.constant dense<0.000000e+00> : vector<2x8x8xf32>
    %180 = tpu.matmul %179, %167, %cst_109 {dimension_numbers = #tpu.dot_dimension_numbers<[2], [1], [1], [2], [0, 0, 0, 1, 1, 2], [0], [0]>} : vector<2x8x8xbf16>, vector<2x8x8xbf16>, vector<2x8x8xf32> -> vector<2x8x8xf32>
    "tpu.trace_stop"() : () -> ()
    %181 = vector.shape_cast %180 : vector<2x8x8xf32> to vector<16x8xf32>
    %182 = arith.truncf %181 : vector<16x8xf32> to vector<16x8xbf16>
    %c3_110 = arith.constant 3 : index
    %c0_111 = arith.constant 0 : index
    %c0_112 = arith.constant 0 : index
    %183 = vector.load %arg8[%c3_110, %c0_111, %c0_112] : memref<4x8x32xbf16, #tpu.memory_space<vmem>>, vector<1x8x32xbf16>
    %184 = vector.shape_cast %183 : vector<1x8x32xbf16> to vector<8x32xbf16>
    %cst_113 = arith.constant dense<0.000000e+00> : vector<16x32xf32>
    %185 = tpu.matmul %182, %184, %cst_113 {dimension_numbers = #tpu.dot_dimension_numbers<[1], [0], [0], [1], [0, 0, 1, 1], [], []>} : vector<16x8xbf16>, vector<8x32xbf16>, vector<16x32xf32> -> vector<16x32xf32>
    %186 = arith.addf %140, %185 : vector<16x32xf32>
    %c0_114 = arith.constant 0 : index
    %c0_115 = arith.constant 0 : index
    %187 = vector.load %arg9[%c0_114, %c0_115] : memref<1x32xf32, #tpu.memory_space<vmem>>, vector<1x32xf32>
    %188 = vector.broadcast %187 : vector<1x32xf32> to vector<16x32xf32>
    %189 = arith.addf %186, %188 : vector<16x32xf32>
    %190 = arith.addf %0, %189 : vector<16x32xf32>
    %c0_116 = arith.constant 0 : index
    %c0_117 = arith.constant 0 : index
    %191 = vector.load %arg10[%c0_116, %c0_117] : memref<1x32xf32, #tpu.memory_space<vmem>>, vector<1x32xf32>
    %c0_118 = arith.constant 0 : index
    %c0_119 = arith.constant 0 : index
    %192 = vector.load %arg11[%c0_118, %c0_119] : memref<1x32xf32, #tpu.memory_space<vmem>>, vector<1x32xf32>
    %cst_120 = arith.constant dense<0.000000e+00> : vector<16xf32>
    %193 = vector.multi_reduction <add>, %190, %cst_120 [1] : vector<16x32xf32> to vector<16xf32>
    %194 = vector.shape_cast %193 : vector<16xf32> to vector<16x1xf32>
    %cst_121 = arith.constant 3.200000e+01 : f32
    %195 = vector.broadcast %cst_121 : f32 to vector<16x1xf32>
    %196 = arith.divf %194, %195 : vector<16x1xf32>
    %197 = vector.broadcast %196 : vector<16x1xf32> to vector<16x32xf32>
    %198 = arith.subf %190, %197 : vector<16x32xf32>
    %199 = arith.mulf %198, %198 : vector<16x32xf32>
    %cst_122 = arith.constant dense<0.000000e+00> : vector<16xf32>
    %200 = vector.multi_reduction <add>, %199, %cst_122 [1] : vector<16x32xf32> to vector<16xf32>
    %201 = vector.shape_cast %200 : vector<16xf32> to vector<16x1xf32>
    %cst_123 = arith.constant 3.200000e+01 : f32
    %202 = vector.broadcast %cst_123 : f32 to vector<16x1xf32>
    %203 = arith.divf %201, %202 : vector<16x1xf32>
    %204 = vector.broadcast %196 : vector<16x1xf32> to vector<16x32xf32>
    %205 = arith.subf %190, %204 : vector<16x32xf32>
    %cst_124 = arith.constant 9.99999997E-7 : f32
    %206 = vector.broadcast %cst_124 : f32 to vector<16x1xf32>
    %207 = arith.addf %203, %206 : vector<16x1xf32>
    %208 = math.rsqrt %207 : vector<16x1xf32>
    %209 = vector.broadcast %208 : vector<16x1xf32> to vector<16x32xf32>
    %210 = arith.mulf %205, %209 : vector<16x32xf32>
    %211 = vector.broadcast %191 : vector<1x32xf32> to vector<16x32xf32>
    %212 = arith.mulf %210, %211 : vector<16x32xf32>
    %213 = vector.broadcast %192 : vector<1x32xf32> to vector<16x32xf32>
    %214 = arith.addf %212, %213 : vector<16x32xf32>
    %215 = arith.truncf %214 : vector<16x32xf32> to vector<16x32xbf16>
    %c0_125 = arith.constant 0 : index
    %c0_126 = arith.constant 0 : index
    %216 = vector.load %arg12[%c0_125, %c0_126] : memref<32x32xbf16, #tpu.memory_space<vmem>>, vector<32x32xbf16>
    %cst_127 = arith.constant dense<0.000000e+00> : vector<16x32xf32>
    %217 = tpu.matmul %215, %216, %cst_127 {dimension_numbers = #tpu.dot_dimension_numbers<[1], [0], [0], [1], [0, 0, 1, 1], [], []>} : vector<16x32xbf16>, vector<32x32xbf16>, vector<16x32xf32> -> vector<16x32xf32>
    %c0_128 = arith.constant 0 : index
    %c0_129 = arith.constant 0 : index
    %218 = vector.load %arg13[%c0_128, %c0_129] : memref<1x32xf32, #tpu.memory_space<vmem>>, vector<1x32xf32>
    %219 = vector.broadcast %218 : vector<1x32xf32> to vector<16x32xf32>
    %220 = arith.addf %217, %219 : vector<16x32xf32>
    %cst_130 = arith.constant 0.000000e+00 : f32
    %221 = vector.broadcast %cst_130 : f32 to vector<16x32xf32>
    %222 = arith.maximumf %220, %221 : vector<16x32xf32>
    %223 = arith.truncf %222 : vector<16x32xf32> to vector<16x32xbf16>
    %c0_131 = arith.constant 0 : index
    %c0_132 = arith.constant 0 : index
    %224 = vector.load %arg14[%c0_131, %c0_132] : memref<32x32xbf16, #tpu.memory_space<vmem>>, vector<32x32xbf16>
    %cst_133 = arith.constant dense<0.000000e+00> : vector<16x32xf32>
    %225 = tpu.matmul %223, %224, %cst_133 {dimension_numbers = #tpu.dot_dimension_numbers<[1], [0], [0], [1], [0, 0, 1, 1], [], []>} : vector<16x32xbf16>, vector<32x32xbf16>, vector<16x32xf32> -> vector<16x32xf32>
    %c0_134 = arith.constant 0 : index
    %c0_135 = arith.constant 0 : index
    %226 = vector.load %arg15[%c0_134, %c0_135] : memref<1x32xf32, #tpu.memory_space<vmem>>, vector<1x32xf32>
    %227 = vector.broadcast %226 : vector<1x32xf32> to vector<16x32xf32>
    %228 = arith.addf %225, %227 : vector<16x32xf32>
    %229 = arith.addf %214, %228 : vector<16x32xf32>
    %c0_136 = arith.constant 0 : index
    %c0_137 = arith.constant 0 : index
    %230 = vector.load %arg16[%c0_136, %c0_137] : memref<1x32xf32, #tpu.memory_space<vmem>>, vector<1x32xf32>
    %c0_138 = arith.constant 0 : index
    %c0_139 = arith.constant 0 : index
    %231 = vector.load %arg17[%c0_138, %c0_139] : memref<1x32xf32, #tpu.memory_space<vmem>>, vector<1x32xf32>
    %cst_140 = arith.constant dense<0.000000e+00> : vector<16xf32>
    %232 = vector.multi_reduction <add>, %229, %cst_140 [1] : vector<16x32xf32> to vector<16xf32>
    %233 = vector.shape_cast %232 : vector<16xf32> to vector<16x1xf32>
    %cst_141 = arith.constant 3.200000e+01 : f32
    %234 = vector.broadcast %cst_141 : f32 to vector<16x1xf32>
    %235 = arith.divf %233, %234 : vector<16x1xf32>
    %236 = vector.broadcast %235 : vector<16x1xf32> to vector<16x32xf32>
    %237 = arith.subf %229, %236 : vector<16x32xf32>
    %238 = arith.mulf %237, %237 : vector<16x32xf32>
    %cst_142 = arith.constant dense<0.000000e+00> : vector<16xf32>
    %239 = vector.multi_reduction <add>, %238, %cst_142 [1] : vector<16x32xf32> to vector<16xf32>
    %240 = vector.shape_cast %239 : vector<16xf32> to vector<16x1xf32>
    %cst_143 = arith.constant 3.200000e+01 : f32
    %241 = vector.broadcast %cst_143 : f32 to vector<16x1xf32>
    %242 = arith.divf %240, %241 : vector<16x1xf32>
    %243 = vector.broadcast %235 : vector<16x1xf32> to vector<16x32xf32>
    %244 = arith.subf %229, %243 : vector<16x32xf32>
    %cst_144 = arith.constant 9.99999997E-7 : f32
    %245 = vector.broadcast %cst_144 : f32 to vector<16x1xf32>
    %246 = arith.addf %242, %245 : vector<16x1xf32>
    %247 = math.rsqrt %246 : vector<16x1xf32>
    %248 = vector.broadcast %247 : vector<16x1xf32> to vector<16x32xf32>
    %249 = arith.mulf %244, %248 : vector<16x32xf32>
    %250 = vector.broadcast %230 : vector<1x32xf32> to vector<16x32xf32>
    %251 = arith.mulf %249, %250 : vector<16x32xf32>
    %252 = vector.broadcast %231 : vector<1x32xf32> to vector<16x32xf32>
    %253 = arith.addf %251, %252 : vector<16x32xf32>
    %c0_145 = arith.constant 0 : index
    %c0_146 = arith.constant 0 : index
    %254 = vector.load %arg18[%c0_145, %c0_146] : memref<16x32xf32, #tpu.memory_space<vmem>>, vector<16x32xf32>
    tpu.vector_store %arg18[%c0_145, %c0_146], %253 {strides = array<i32>} : memref<16x32xf32, #tpu.memory_space<vmem>>, vector<16x32xf32>,
    return
  }
  func.func @transform_0(%arg0: i32) -> (i32, i32) {
    %c0_i32 = arith.constant 0 : i32
    %c0_i32_0 = arith.constant 0 : i32
    return %arg0, %c0_i32 : i32, i32
  }
  func.func @transform_1(%arg0: i32) -> (i32, i32, i32) {
    %c0_i32 = arith.constant 0 : i32
    %c0_i32_0 = arith.constant 0 : i32
    %c0_i32_1 = arith.constant 0 : i32
    %c0_i32_2 = arith.constant 0 : i32
    return %c0_i32, %c0_i32_0, %c0_i32_1 : i32, i32, i32
  }
  func.func @transform_2(%arg0: i32) -> (i32, i32, i32) {
    %c0_i32 = arith.constant 0 : i32
    %c0_i32_0 = arith.constant 0 : i32
    %c0_i32_1 = arith.constant 0 : i32
    %c0_i32_2 = arith.constant 0 : i32
    return %c0_i32, %c0_i32_0, %c0_i32_1 : i32, i32, i32
  }
  func.func @transform_3(%arg0: i32) -> (i32, i32, i32) {
    %c0_i32 = arith.constant 0 : i32
    %c0_i32_0 = arith.constant 0 : i32
    %c0_i32_1 = arith.constant 0 : i32
    %c0_i32_2 = arith.constant 0 : i32
    return %c0_i32, %c0_i32_0, %c0_i32_1 : i32, i32, i32
  }
  func.func @transform_4(%arg0: i32) -> (i32, i32, i32) {
    %c0_i32 = arith.constant 0 : i32
    %c0_i32_0 = arith.constant 0 : i32
    %c0_i32_1 = arith.constant 0 : i32
    %c0_i32_2 = arith.constant 0 : i32
    return %c0_i32, %c0_i32_0, %c0_i32_1 : i32, i32, i32
  }
  func.func @transform_5(%arg0: i32) -> (i32, i32, i32) {
    %c0_i32 = arith.constant 0 : i32
    %c0_i32_0 = arith.constant 0 : i32
    %c0_i32_1 = arith.constant 0 : i32
    %c0_i32_2 = arith.constant 0 : i32
    return %c0_i32, %c0_i32_0, %c0_i32_1 : i32, i32, i32
  }
  func.func @transform_6(%arg0: i32) -> (i32, i32, i32) {
    %c0_i32 = arith.constant 0 : i32
    %c0_i32_0 = arith.constant 0 : i32
    %c0_i32_1 = arith.constant 0 : i32
    %c0_i32_2 = arith.constant 0 : i32
    return %c0_i32, %c0_i32_0, %c0_i32_1 : i32, i32, i32
  }
  func.func @transform_7(%arg0: i32) -> (i32, i32, i32) {
    %c0_i32 = arith.constant 0 : i32
    %c0_i32_0 = arith.constant 0 : i32
    %c0_i32_1 = arith.constant 0 : i32
    %c0_i32_2 = arith.constant 0 : i32
    return %c0_i32, %c0_i32_0, %c0_i32_1 : i32, i32, i32
  }
  func.func @transform_8(%arg0: i32) -> (i32, i32) {
    %c0_i32 = arith.constant 0 : i32
    %c0_i32_0 = arith.constant 0 : i32
    %c0_i32_1 = arith.constant 0 : i32
    return %c0_i32, %c0_i32_0 : i32, i32
  }
  func.func @transform_9(%arg0: i32) -> (i32, i32) {
    %c0_i32 = arith.constant 0 : i32
    %c0_i32_0 = arith.constant 0 : i32
    %c0_i32_1 = arith.constant 0 : i32
    return %c0_i32, %c0_i32_0 : i32, i32
  }
  func.func @transform_10(%arg0: i32) -> (i32, i32) {
    %c0_i32 = arith.constant 0 : i32
    %c0_i32_0 = arith.constant 0 : i32
    %c0_i32_1 = arith.constant 0 : i32
    return %c0_i32, %c0_i32_0 : i32, i32
  }
  func.func @transform_11(%arg0: i32) -> (i32, i32) {
    %c0_i32 = arith.constant 0 : i32
    %c0_i32_0 = arith.constant 0 : i32
    %c0_i32_1 = arith.constant 0 : i32
    return %c0_i32, %c0_i32_0 : i32, i32
  }
  func.func @transform_12(%arg0: i32) -> (i32, i32) {
    %c0_i32 = arith.constant 0 : i32
    %c0_i32_0 = arith.constant 0 : i32
    %c0_i32_1 = arith.constant 0 : i32
    return %c0_i32, %c0_i32_0 : i32, i32
  }
  func.func @transform_13(%arg0: i32) -> (i32, i32) {
    %c0_i32 = arith.constant 0 : i32
    %c0_i32_0 = arith.constant 0 : i32
    %c0_i32_1 = arith.constant 0 : i32
    return %c0_i32, %c0_i32_0 : i32, i32
  }
  func.func @transform_14(%arg0: i32) -> (i32, i32) {
    %c0_i32 = arith.constant 0 : i32
    %c0_i32_0 = arith.constant 0 : i32
    %c0_i32_1 = arith.constant 0 : i32
    return %c0_i32, %c0_i32_0 : i32, i32
  }
  func.func @transform_15(%arg0: i32) -> (i32, i32) {
    %c0_i32 = arith.constant 0 : i32
    %c0_i32_0 = arith.constant 0 : i32
    %c0_i32_1 = arith.constant 0 : i32
    return %c0_i32, %c0_i32_0 : i32, i32
  }
  func.func @transform_16(%arg0: i32) -> (i32, i32) {
    %c0_i32 = arith.constant 0 : i32
    %c0_i32_0 = arith.constant 0 : i32
    %c0_i32_1 = arith.constant 0 : i32
    return %c0_i32, %c0_i32_0 : i32, i32
  }
  func.func @transform_17(%arg0: i32) -> (i32, i32) {
    %c0_i32 = arith.constant 0 : i32
    %c0_i32_0 = arith.constant 0 : i32
    return %arg0, %c0_i32 : i32, i32
  }
}

</mosaic_0001>

<bundles_post_ra>
// kernel: tpu_custom_call.1
= control target key start
LH: loop header
LB: loop body
LE: loop exit
PB: predicated region body
PF: predicated region fallthrough
CT: control target
= control target key end

     0   :  { %s3912_s0 = inlined_call_operand.hbm [shape: f32[16,32], index: 0, kind: input, shape index: {}]   ;;  %s3913_s1 = inlined_call_operand.hbm [shape: bf16[4,32,8], index: 1, kind: input, shape index: {}]   ;;  %s3914_s2 = inlined_call_operand.hbm [shape: bf16[4,32,8], index: 2, kind: input, shape index: {}]   ;;  %s3915_s3 = inlined_call_operand.hbm [shape: bf16[4,32,8], index: 3, kind: input, shape index: {}]   ;;  %s3916_s4 = inlined_call_operand.hbm [shape: f32[4,1,8], index: 4, kind: input, shape index: {}]   ;;  %s3917_s5 = inlined_call_operand.hbm [shape: f32[4,1,8], index: 5, kind: input, shape index: {}]   ;;  %s3918_s6 = inlined_call_operand.hbm [shape: f32[4,1,8], index: 6, kind: input, shape index: {}]   ;;  %s3919_s7 = inlined_call_operand.hbm [shape: bf16[4,8,32], index: 7, kind: input, shape index: {}]   ;;  %s3920_s8 = inlined_call_operand.hbm [shape: f32[1,32], index: 8, kind: input, shape index: {}]   ;;  %s3921_s9 = inlined_call_operand.hbm [shape: f32[1,32], index: 9, kind: input, shape index: {}]   ;;  %s3922_s10 = inlined_call_operand.hbm [shape: f32[1,32], index: 10, kind: input, shape index: {}]   ;;  %s3923_s11 = inlined_call_operand.hbm [shape: bf16[32,32], index: 11, kind: input, shape index: {}]   ;;  %s3924_s12 = inlined_call_operand.hbm [shape: f32[1,32], index: 12, kind: input, shape index: {}]   ;;  %s3925_s13 = inlined_call_operand.hbm [shape: bf16[32,32], index: 13, kind: input, shape index: {}]   ;;  %s3926_s14 = inlined_call_operand.hbm [shape: f32[1,32], index: 14, kind: input, shape index: {}]   ;;  %s3927_s15 = inlined_call_operand.hbm [shape: f32[1,32], index: 15, kind: input, shape index: {}]   ;;  %s3928_s16 = inlined_call_operand.hbm [shape: f32[1,32], index: 16, kind: input, shape index: {}]   ;;  %s3929_s17 = inlined_call_operand.hbm [shape: f32[16,32], index: 17, kind: output, shape index: {}]  }
   0x1   :  { %3933 = sst [smem:[#allocation40_spill]] %s3912_s0 }
   0x2   :  { %3934 = sst [smem:[#allocation41_spill]] %s3913_s1 }
   0x3   :  { %3935 = sst [smem:[#allocation42_spill]] %s3929_s17 }
   0x4   :  { %22 = vsyncpa [#allocation3], 0 }
   0x5   :  { %23 = vsyncpa [#allocation6], 0 }
   0x6   :  { %24 = vsyncpa [#allocation9], 0 }
   0x7   :  { %25 = vsyncpa [#allocation12], 0 }
   0x8   :  { %26 = vsyncpa [#allocation15], 0 }
   0x9   :  { %27 = vsyncpa [#allocation18], 0 }
   0xa   :  { %28 = vsyncpa [#allocation21], 0 }
   0xb   :  { %29 = vsyncpa [#allocation24], 0 }
   0xc   :  { %30 = vsyncpa [#allocation27], 0 }
   0xd   :  { %31 = vsyncpa [#allocation4], 0  ;;  %s3302_s24 = smov [#allocation5]   ;;  %s3936_s28 = sld [smem:[#allocation41_spill]] }
   0xe   :  { %s49_s25 = sshll.u32 %s3302_s24, 4  ;;  %s50_s25 = int_to_ptr.vmem [resolvable:$true] %s49_s25 }
  0x13   :  { %s2886_s29 = scalar_lea.hbm %s3936_s28, 1024 }
  0x14   :  { %p2887_p0 = scmp.ne.s32.totalorder %s3936_s28, %s2886_s29  ;;  %p2890_p1 = scmp.lt.u32.totalorder %s2886_s29, %s3936_s28 }
  0x16   :  { %p2892_p2 = pnand %p2890_p1, %p2887_p0 }
  0x18   :  { %2895 = shalt.err (!%p2892_p2)
}
  0x19   :  { %s2896_s1 = scalar_lea.vmem %s50_s25, 1024  ;;  %p2901_p4 = scmp.lt.s32.totalorder %s50_s25, %s50_s25 }
  0x1a   :  { %p2897_p3 = scmp.ne.s32.totalorder %s50_s25, %s2896_s1  ;;  %p2902_p5 = scmp.lt.s32.totalorder %s2896_s1, %s2896_s1 }
  0x1c   :  { %p2903_p6 = por %p2902_p5, %p2901_p4 }
  0x1e   :  { %p2904_p7 = pnand %p2903_p6, %p2897_p3 }
  0x20   :  { %2907 = shalt.err (!%p2904_p7)
}
  0x21   :  { %s3303_s20 = smov 64   ;;  %s3304_s21 = smov 4  }
  0x22   :  { %55 = dma.hbm_to_vmem [thread:$0]  %s3936_s28, 1024, %s50_s25, [#allocation6], %s3303_s20, %s3303_s20, %s3304_s21  }
  0x23   :  { %s3305_s24 = smov [#allocation8]   ;;  %s2908_s0 = scalar_lea.hbm %s3915_s3, 1024 }
  0x24   :  { %s73_s26 = sshll.u32 %s3305_s24, 4  ;;  %p2909_p8 = scmp.ne.s32.totalorder %s3915_s3, %s2908_s0  ;;  %s74_s26 = int_to_ptr.vmem [resolvable:$true] %s73_s26 }
  0x25   :  { %p2912_p9 = scmp.lt.u32.totalorder %s2908_s0, %s3915_s3 }
  0x27   :  { %p2914_p10 = pnand %p2912_p9, %p2909_p8 }
  0x29   :  { %2917 = shalt.err (!%p2914_p10)
}
  0x2a   :  { %s2918_s17 = scalar_lea.vmem %s74_s26, 1024  ;;  %p2923_p12 = scmp.lt.s32.totalorder %s74_s26, %s74_s26 }
  0x2b   :  { %p2919_p11 = scmp.ne.s32.totalorder %s74_s26, %s2918_s17  ;;  %p2924_p13 = scmp.lt.s32.totalorder %s2918_s17, %s2918_s17 }
  0x2d   :  { %p2925_p0 = por %p2924_p13, %p2923_p12 }
  0x2f   :  { %p2926_p1 = pnand %p2925_p0, %p2919_p11 }
  0x31   :  { %2929 = shalt.err (!%p2926_p1)
}
  0x32   :  { %79 = dma.hbm_to_vmem [thread:$0]  %s3915_s3, 1024, %s74_s26, [#allocation9], %s3303_s20, %s3303_s20, %s3304_s21  }
  0x33   :  { %s3306_s22 = smov [#allocation11]   ;;  %s3307_s24 = smov [#allocation14]  }
  0x34   :  { %s97_s23 = sshll.u32 %s3306_s22, 4  ;;  %s121_s27 = sshll.u32 %s3307_s24, 4  ;;  %s98_s23 = int_to_ptr.vmem [resolvable:$true] %s97_s23  ;;  %s3448_s27 = int_to_ptr.vmem [resolvable:$true] %s121_s27 }
  0x35   :  { %s2930_s17 = scalar_lea.hbm %s3917_s5, 64 }
  0x36   :  { %p2931_p2 = scmp.ne.s32.totalorder %s3917_s5, %s2930_s17  ;;  %p2934_p3 = scmp.lt.u32.totalorder %s2930_s17, %s3917_s5 }
  0x38   :  { %p2936_p4 = pnand %p2934_p3, %p2931_p2 }
  0x3a   :  { %2939 = shalt.err (!%p2936_p4)
}
  0x3b   :  { %s2940_s3 = scalar_lea.vmem %s98_s23, 64  ;;  %p2945_p6 = scmp.lt.s32.totalorder %s98_s23, %s98_s23 }
  0x3c   :  { %p2941_p5 = scmp.ne.s32.totalorder %s98_s23, %s2940_s3  ;;  %p2946_p7 = scmp.lt.s32.totalorder %s2940_s3, %s2940_s3 }
  0x3e   :  { %p2947_p8 = por %p2946_p7, %p2945_p6 }
  0x40   :  { %p2948_p9 = pnand %p2947_p8, %p2941_p5 }
  0x42   :  { %2951 = shalt.err (!%p2948_p9)
}
  0x43   :  { %s3308_s26 = smov 16   ;;  %s3309_s25 = smov 1  }
  0x44   :  { %103 = dma.hbm_to_vmem [thread:$0]  %s3917_s5, 64, %s98_s23, [#allocation12], %s3308_s26, %s3308_s26, %s3309_s25  }
  0x45   :  { %s2952_s0 = scalar_lea.hbm %s3919_s7, 256 }
  0x46   :  { %p2953_p10 = scmp.ne.s32.totalorder %s3919_s7, %s2952_s0  ;;  %p2956_p11 = scmp.lt.u32.totalorder %s2952_s0, %s3919_s7 }
  0x48   :  { %p2958_p12 = pnand %p2956_p11, %p2953_p10 }
  0x4a   :  { %2961 = shalt.err (!%p2958_p12)
}
  0x4b   :  { %s2962_s1 = scalar_lea.vmem %s3448_s27, 256  ;;  %p2967_p0 = scmp.lt.s32.totalorder %s3448_s27, %s3448_s27 }
  0x4c   :  { %p2963_p13 = scmp.ne.s32.totalorder %s3448_s27, %s2962_s1  ;;  %p2968_p1 = scmp.lt.s32.totalorder %s2962_s1, %s2962_s1 }
  0x4e   :  { %p2969_p2 = por %p2968_p1, %p2967_p0 }
  0x50   :  { %p2970_p3 = pnand %p2969_p2, %p2963_p13 }
  0x52   :  { %2973 = shalt.err (!%p2970_p3)
}
  0x53   :  { %127 = dma.hbm_to_vmem [thread:$0]  %s3919_s7, 256, %s3448_s27, [#allocation15], %s3303_s20, %s3303_s20, %s3304_s21  }
  0x54   :  { %s3310_s3 = smov [#allocation17]   ;;  %s3311_s22 = smov [#allocation20]  }
  0x55   :  { %s144_s28 = sshll.u32 %s3310_s3, 4  ;;  %s163_s24 = sshll.u32 %s3311_s22, 4  ;;  %s145_s28 = int_to_ptr.vmem [resolvable:$true] %s144_s28  ;;  %s3485_s24 = int_to_ptr.vmem [resolvable:$true] %s163_s24 }
  0x56   :  { %s2974_s17 = scalar_lea.hbm %s3921_s9, 16 }
  0x57   :  { %p2975_p4 = scmp.ne.s32.totalorder %s3921_s9, %s2974_s17  ;;  %p2978_p5 = scmp.lt.u32.totalorder %s2974_s17, %s3921_s9 }
  0x59   :  { %p2980_p6 = pnand %p2978_p5, %p2975_p4 }
  0x5b   :  { %2983 = shalt.err (!%p2980_p6)
}
  0x5c   :  { %s2984_s7 = scalar_lea.vmem %s145_s28, 16  ;;  %s2988_s27 = scalar_lea.vmem %s145_s28, 32 }
  0x5d   :  { %p2985_p7 = scmp.ne.s32.totalorder %s145_s28, %s2984_s7  ;;  %p2989_p8 = scmp.lt.s32.totalorder %s145_s28, %s145_s28 }
  0x5e   :  { %p2990_p9 = scmp.lt.s32.totalorder %s2988_s27, %s2984_s7 }
  0x60   :  { %p2991_p10 = por %p2990_p9, %p2989_p8 }
  0x62   :  { %p2992_p11 = pnand %p2991_p10, %p2985_p7 }
  0x64   :  { %2995 = shalt.err (!%p2992_p11)
}
  0x65   :  { %147 = dma.hbm_to_vmem [thread:$0]  %s3921_s9, 16, %s145_s28, [#allocation18]  }
  0x66   :  { %s2996_s29 = scalar_lea.hbm %s3923_s11, 256 }
  0x67   :  { %p2997_p12 = scmp.ne.s32.totalorder %s3923_s11, %s2996_s29  ;;  %p3000_p13 = scmp.lt.u32.totalorder %s2996_s29, %s3923_s11 }
  0x69   :  { %p3002_p0 = pnand %p3000_p13, %p2997_p12 }
  0x6b   :  { %3005 = shalt.err (!%p3002_p0)
}
  0x6c   :  { %s3006_s19 = scalar_lea.vmem %s3485_s24, 256  ;;  %p3011_p2 = scmp.lt.s32.totalorder %s3485_s24, %s3485_s24 }
  0x6d   :  { %p3007_p1 = scmp.ne.s32.totalorder %s3485_s24, %s3006_s19  ;;  %p3012_p3 = scmp.lt.s32.totalorder %s3006_s19, %s3006_s19 }
  0x6f   :  { %p3013_p4 = por %p3012_p3, %p3011_p2 }
  0x71   :  { %p3014_p5 = pnand %p3013_p4, %p3007_p1 }
  0x73   :  { %3017 = shalt.err (!%p3014_p5)
}
  0x74   :  { %169 = dma.hbm_to_vmem [thread:$0]  %s3923_s11, 256, %s3485_s24, [#allocation21], %s3303_s20, %s3303_s20, %s3304_s21  }
  0x75   :  { %s3312_s1 = smov [#allocation23]   ;;  %s3313_s27 = smov [#allocation26]  }
  0x76   :  { %s185_s7 = sshll.u32 %s3312_s1, 4  ;;  %s208_s5 = sshll.u32 %s3313_s27, 4  ;;  %s186_s7 = int_to_ptr.vmem [resolvable:$true] %s185_s7  ;;  %s209_s5 = int_to_ptr.vmem [resolvable:$true] %s208_s5 }
  0x77   :  { %s3018_s22 = scalar_lea.hbm %s3925_s13, 256 }
  0x78   :  { %p3019_p6 = scmp.ne.s32.totalorder %s3925_s13, %s3018_s22  ;;  %p3022_p7 = scmp.lt.u32.totalorder %s3018_s22, %s3925_s13 }
  0x7a   :  { %p3024_p8 = pnand %p3022_p7, %p3019_p6 }
  0x7c   :  { %3027 = shalt.err (!%p3024_p8)
}
  0x7d   :  { %s3028_s11 = scalar_lea.vmem %s186_s7, 256  ;;  %p3033_p10 = scmp.lt.s32.totalorder %s186_s7, %s186_s7 }
  0x7e   :  { %p3029_p9 = scmp.ne.s32.totalorder %s186_s7, %s3028_s11  ;;  %p3034_p11 = scmp.lt.s32.totalorder %s3028_s11, %s3028_s11 }
  0x80   :  { %p3035_p12 = por %p3034_p11, %p3033_p10 }
  0x82   :  { %p3036_p13 = pnand %p3035_p12, %p3029_p9 }
  0x84   :  { %3039 = shalt.err (!%p3036_p13)
}
  0x85   :  { %191 = dma.hbm_to_vmem [thread:$0]  %s3925_s13, 256, %s186_s7, [#allocation24], %s3303_s20, %s3303_s20, %s3304_s21  }
  0x86   :  { %s3040_s28 = scalar_lea.hbm %s3927_s15, 16 }
  0x87   :  { %p3041_p0 = scmp.ne.s32.totalorder %s3927_s15, %s3040_s28  ;;  %p3044_p1 = scmp.lt.u32.totalorder %s3040_s28, %s3927_s15 }
  0x89   :  { %p3046_p2 = pnand %p3044_p1, %p3041_p0 }
  0x8b   :  { %3049 = shalt.err (!%p3046_p2)
}
  0x8c   :  { %s3050_s22 = scalar_lea.vmem %s209_s5, 16  ;;  %s3054_s29 = scalar_lea.vmem %s209_s5, 32 }
  0x8d   :  { %p3051_p3 = scmp.ne.s32.totalorder %s209_s5, %s3050_s22  ;;  %p3055_p4 = scmp.lt.s32.totalorder %s209_s5, %s209_s5 }
  0x8e   :  { %p3056_p5 = scmp.lt.s32.totalorder %s3054_s29, %s3050_s22 }
  0x90   :  { %p3057_p6 = por %p3056_p5, %p3055_p4 }
  0x92   :  { %p3058_p7 = pnand %p3057_p6, %p3051_p3 }
  0x94   :  { %3061 = shalt.err (!%p3058_p7)
}
  0x95   :  { %211 = dma.hbm_to_vmem [thread:$0]  %s3927_s15, 16, %s209_s5, [#allocation27]  }
  0x96   :  { %s3314_s0 = smov [#allocation2]   ;;  %s3937_s24 = sld [smem:[#allocation40_spill]] }
  0x97   :  { %s37_s17 = sshll.u32 %s3314_s0, 4  ;;  %s38_s17 = int_to_ptr.vmem [resolvable:$true] %s37_s17 }
  0x9c   :  { %s3062_s18 = scalar_lea.hbm %s3937_s24, 256 }
  0x9d   :  { %p3063_p8 = scmp.ne.s32.totalorder %s3937_s24, %s3062_s18  ;;  %p3066_p9 = scmp.lt.u32.totalorder %s3062_s18, %s3937_s24 }
  0x9f   :  { %p3068_p10 = pnand %p3066_p9, %p3063_p8 }
  0xa1   :  { %3071 = shalt.err (!%p3068_p10)
}
  0xa2   :  { %s3072_s27 = scalar_lea.vmem %s38_s17, 256  ;;  %p3077_p12 = scmp.lt.s32.totalorder %s38_s17, %s38_s17 }
  0xa3   :  { %p3073_p11 = scmp.ne.s32.totalorder %s38_s17, %s3072_s27  ;;  %p3078_p13 = scmp.lt.s32.totalorder %s3072_s27, %s3072_s27 }
  0xa5   :  { %p3079_p0 = por %p3078_p13, %p3077_p12 }
  0xa7   :  { %p3080_p1 = pnand %p3079_p0, %p3073_p11 }
  0xa9   :  { %3083 = shalt.err (!%p3080_p1)
}
  0xaa   :  { %s3315_s15 = smov 128   ;;  %s3316_s5 = smov 8  }
  0xab   :  { %43 = dma.hbm_to_vmem [thread:$0]  %s3937_s24, 256, %s38_s17, [#allocation3], %s3315_s15, %s3315_s15, %s3316_s5  }
  0xac   :  { %s3317_s22 = smov [#allocation7]   ;;  %s3318_s13 = smov [#allocation10]  }
  0xad   :  { %s61_s29 = sshll.u32 %s3317_s22, 4  ;;  %s85_s7 = sshll.u32 %s3318_s13, 4  ;;  %s62_s29 = int_to_ptr.vmem [resolvable:$true] %s61_s29  ;;  %s86_s7 = int_to_ptr.vmem [resolvable:$true] %s85_s7 }
  0xae   :  { %s3084_s11 = scalar_lea.hbm %s3914_s2, 1024 }
  0xaf   :  { %p3085_p2 = scmp.ne.s32.totalorder %s3914_s2, %s3084_s11  ;;  %p3088_p3 = scmp.lt.u32.totalorder %s3084_s11, %s3914_s2 }
  0xb1   :  { %p3090_p4 = pnand %p3088_p3, %p3085_p2 }
  0xb3   :  { %3093 = shalt.err (!%p3090_p4)
}
  0xb4   :  { %s3094_s17 = scalar_lea.vmem %s62_s29, 1024  ;;  %p3099_p6 = scmp.lt.s32.totalorder %s62_s29, %s62_s29 }
  0xb5   :  { %p3095_p5 = scmp.ne.s32.totalorder %s62_s29, %s3094_s17  ;;  %p3100_p7 = scmp.lt.s32.totalorder %s3094_s17, %s3094_s17 }
  0xb7   :  { %p3101_p8 = por %p3100_p7, %p3099_p6 }
  0xb9   :  { %p3102_p9 = pnand %p3101_p8, %p3095_p5 }
  0xbb   :  { %3105 = shalt.err (!%p3102_p9)
}
  0xbc   :  { %67 = dma.hbm_to_vmem [thread:$0]  %s3914_s2, 1024, %s62_s29, [#allocation6], %s3303_s20, %s3303_s20, %s3304_s21  }
  0xbd   :  { %s3106_s3 = scalar_lea.hbm %s3916_s4, 64 }
  0xbe   :  { %p3107_p10 = scmp.ne.s32.totalorder %s3916_s4, %s3106_s3  ;;  %p3110_p11 = scmp.lt.u32.totalorder %s3106_s3, %s3916_s4 }
  0xc0   :  { %p3112_p12 = pnand %p3110_p11, %p3107_p10 }
  0xc2   :  { %3115 = shalt.err (!%p3112_p12)
}
  0xc3   :  { %s3116_s11 = scalar_lea.vmem %s86_s7, 64  ;;  %p3121_p0 = scmp.lt.s32.totalorder %s86_s7, %s86_s7 }
  0xc4   :  { %p3117_p13 = scmp.ne.s32.totalorder %s86_s7, %s3116_s11  ;;  %p3122_p1 = scmp.lt.s32.totalorder %s3116_s11, %s3116_s11 }
  0xc6   :  { %p3123_p2 = por %p3122_p1, %p3121_p0 }
  0xc8   :  { %p3124_p3 = pnand %p3123_p2, %p3117_p13 }
  0xca   :  { %3127 = shalt.err (!%p3124_p3)
}
  0xcb   :  { %91 = dma.hbm_to_vmem [thread:$0]  %s3916_s4, 64, %s86_s7, [#allocation9], %s3308_s26, %s3308_s26, %s3309_s25  }
  0xcc   :  { %s3319_s21 = smov [#allocation13]   ;;  %s3320_s18 = smov [#allocation16]  }
  0xcd   :  { %s109_s29 = sshll.u32 %s3319_s21, 4  ;;  %s134_s19 = sshll.u32 %s3320_s18, 4  ;;  %s110_s29 = int_to_ptr.vmem [resolvable:$true] %s109_s29  ;;  %s135_s19 = int_to_ptr.vmem [resolvable:$true] %s134_s19 }
  0xce   :  { %s3128_s17 = scalar_lea.hbm %s3918_s6, 64 }
  0xcf   :  { %p3129_p4 = scmp.ne.s32.totalorder %s3918_s6, %s3128_s17  ;;  %p3132_p5 = scmp.lt.u32.totalorder %s3128_s17, %s3918_s6 }
  0xd1   :  { %p3134_p6 = pnand %p3132_p5, %p3129_p4 }
  0xd3   :  { %3137 = shalt.err (!%p3134_p6)
}
  0xd4   :  { %s3138_s4 = scalar_lea.vmem %s110_s29, 64  ;;  %p3143_p8 = scmp.lt.s32.totalorder %s110_s29, %s110_s29 }
  0xd5   :  { %p3139_p7 = scmp.ne.s32.totalorder %s110_s29, %s3138_s4  ;;  %p3144_p9 = scmp.lt.s32.totalorder %s3138_s4, %s3138_s4 }
  0xd7   :  { %p3145_p10 = por %p3144_p9, %p3143_p8 }
  0xd9   :  { %p3146_p11 = pnand %p3145_p10, %p3139_p7 }
  0xdb   :  { %3149 = shalt.err (!%p3146_p11)
}
  0xdc   :  { %115 = dma.hbm_to_vmem [thread:$0]  %s3918_s6, 64, %s110_s29, [#allocation12], %s3308_s26, %s3308_s26, %s3309_s25  }
  0xdd   :  { %s3150_s0 = scalar_lea.hbm %s3920_s8, 16 }
  0xde   :  { %p3151_p12 = scmp.ne.s32.totalorder %s3920_s8, %s3150_s0  ;;  %p3154_p13 = scmp.lt.u32.totalorder %s3150_s0, %s3920_s8 }
  0xe0   :  { %p3156_p0 = pnand %p3154_p13, %p3151_p12 }
  0xe2   :  { %3159 = shalt.err (!%p3156_p0)
}
  0xe3   :  { %s3160_s21 = scalar_lea.vmem %s135_s19, 16  ;;  %s3164_s18 = scalar_lea.vmem %s135_s19, 32 }
  0xe4   :  { %p3161_p1 = scmp.ne.s32.totalorder %s135_s19, %s3160_s21  ;;  %p3165_p2 = scmp.lt.s32.totalorder %s135_s19, %s135_s19 }
  0xe5   :  { %p3166_p3 = scmp.lt.s32.totalorder %s3164_s18, %s3160_s21 }
  0xe7   :  { %p3167_p4 = por %p3166_p3, %p3165_p2 }
  0xe9   :  { %p3168_p5 = pnand %p3167_p4, %p3161_p1 }
  0xeb   :  { %3171 = shalt.err (!%p3168_p5)
}
  0xec   :  { %137 = dma.hbm_to_vmem [thread:$0]  %s3920_s8, 16, %s135_s19, [#allocation15]  }
  0xed   :  { %s3321_s25 = smov [#allocation19]   ;;  %s3322_s9 = smov [#allocation22]  }
  0xee   :  { %s154_s29 = sshll.u32 %s3321_s25, 4  ;;  %s176_s28 = sshll.u32 %s3322_s9, 4  ;;  %s155_s29 = int_to_ptr.vmem [resolvable:$true] %s154_s29  ;;  %s177_s28 = int_to_ptr.vmem [resolvable:$true] %s176_s28 }
  0xef   :  { %s3172_s1 = scalar_lea.hbm %s3922_s10, 16 }
  0xf0   :  { %p3173_p6 = scmp.ne.s32.totalorder %s3922_s10, %s3172_s1  ;;  %p3176_p7 = scmp.lt.u32.totalorder %s3172_s1, %s3922_s10 }
  0xf2   :  { %p3178_p8 = pnand %p3176_p7, %p3173_p6 }
  0xf4   :  { %3181 = shalt.err (!%p3178_p8)
}
  0xf5   :  { %s3182_s8 = scalar_lea.vmem %s155_s29, 16  ;;  %s3186_s19 = scalar_lea.vmem %s155_s29, 32 }
  0xf6   :  { %p3183_p9 = scmp.ne.s32.totalorder %s155_s29, %s3182_s8  ;;  %p3187_p10 = scmp.lt.s32.totalorder %s155_s29, %s155_s29 }
  0xf7   :  { %p3188_p11 = scmp.lt.s32.totalorder %s3186_s19, %s3182_s8 }
  0xf9   :  { %p3189_p12 = por %p3188_p11, %p3187_p10 }
  0xfb   :  { %p3190_p13 = pnand %p3189_p12, %p3183_p9 }
  0xfd   :  { %3193 = shalt.err (!%p3190_p13)
}
  0xfe   :  { %157 = dma.hbm_to_vmem [thread:$0]  %s3922_s10, 16, %s155_s29, [#allocation18]  }
  0xff   :  { %s3194_s30 = scalar_lea.hbm %s3924_s12, 16 }
 0x100   :  { %p3195_p0 = scmp.ne.s32.totalorder %s3924_s12, %s3194_s30  ;;  %p3198_p1 = scmp.lt.u32.totalorder %s3194_s30, %s3924_s12 }
 0x102   :  { %p3200_p2 = pnand %p3198_p1, %p3195_p0 }
 0x104   :  { %3203 = shalt.err (!%p3200_p2)
}
 0x105   :  { %s3204_s18 = scalar_lea.vmem %s177_s28, 16  ;;  %s3208_s6 = scalar_lea.vmem %s177_s28, 32 }
 0x106   :  { %p3205_p3 = scmp.ne.s32.totalorder %s177_s28, %s3204_s18  ;;  %p3209_p4 = scmp.lt.s32.totalorder %s177_s28, %s177_s28 }
 0x107   :  { %p3210_p5 = scmp.lt.s32.totalorder %s3208_s6, %s3204_s18 }
 0x109   :  { %p3211_p6 = por %p3210_p5, %p3209_p4 }
 0x10b   :  { %p3212_p7 = pnand %p3211_p6, %p3205_p3 }
 0x10d   :  { %3215 = shalt.err (!%p3212_p7)
}
 0x10e   :  { %179 = dma.hbm_to_vmem [thread:$0]  %s3924_s12, 16, %s177_s28, [#allocation21]  }
 0x10f   :  { %s3323_s25 = smov [#allocation25]   ;;  %s3324_s9 = smov [#allocation28]  }
 0x110   :  { %s198_s29 = sshll.u32 %s3323_s25, 4  ;;  %s218_s17 = sshll.u32 %s3324_s9, 4  ;;  %s199_s29 = int_to_ptr.vmem [resolvable:$true] %s198_s29  ;;  %s219_s17 = int_to_ptr.vmem [resolvable:$true] %s218_s17 }
 0x111   :  { %s3216_s27 = scalar_lea.hbm %s3926_s14, 16 }
 0x112   :  { %p3217_p8 = scmp.ne.s32.totalorder %s3926_s14, %s3216_s27  ;;  %p3220_p9 = scmp.lt.u32.totalorder %s3216_s27, %s3926_s14 }
 0x114   :  { %p3222_p10 = pnand %p3220_p9, %p3217_p8 }
 0x116   :  { %3225 = shalt.err (!%p3222_p10)
}
 0x117   :  { %s3226_s12 = scalar_lea.vmem %s199_s29, 16  ;;  %s3230_s28 = scalar_lea.vmem %s199_s29, 32 }
 0x118   :  { %p3227_p11 = scmp.ne.s32.totalorder %s199_s29, %s3226_s12  ;;  %p3231_p12 = scmp.lt.s32.totalorder %s199_s29, %s199_s29 }
 0x119   :  { %p3232_p13 = scmp.lt.s32.totalorder %s3230_s28, %s3226_s12 }
 0x11b   :  { %p3233_p0 = por %p3232_p13, %p3231_p12 }
 0x11d   :  { %p3234_p1 = pnand %p3233_p0, %p3227_p11 }
 0x11f   :  { %3237 = shalt.err (!%p3234_p1)
}
 0x120   :  { %201 = dma.hbm_to_vmem [thread:$0]  %s3926_s14, 16, %s199_s29, [#allocation24]  }
 0x121   :  { %s3238_s0 = scalar_lea.hbm %s3928_s16, 16 }
 0x122   :  { %p3239_p2 = scmp.ne.s32.totalorder %s3928_s16, %s3238_s0  ;;  %p3242_p3 = scmp.lt.u32.totalorder %s3238_s0, %s3928_s16 }
 0x124   :  { %p3244_p4 = pnand %p3242_p3, %p3239_p2 }
 0x126   :  { %3247 = shalt.err (!%p3244_p4)
}
 0x127   :  { %s3248_s21 = scalar_lea.vmem %s219_s17, 16  ;;  %s3252_s18 = scalar_lea.vmem %s219_s17, 32 }
 0x128   :  { %p3249_p5 = scmp.ne.s32.totalorder %s219_s17, %s3248_s21  ;;  %p3253_p6 = scmp.lt.s32.totalorder %s219_s17, %s219_s17 }
 0x129   :  { %p3254_p7 = scmp.lt.s32.totalorder %s3252_s18, %s3248_s21 }
 0x12b   :  { %p3255_p8 = por %p3254_p7, %p3253_p6 }
 0x12d   :  { %p3256_p9 = pnand %p3255_p8, %p3249_p5 }
 0x12f   :  { %3259 = shalt.err (!%p3256_p9)
}
 0x130   :  { %221 = dma.hbm_to_vmem [thread:$0]  %s3928_s16, 16, %s219_s17, [#allocation27]  }
 0x131   :  { %3282 = dma.done.wait [#allocation3], 256  }
 0x132   :  { %3283 = vsyncadd [#allocation3], 4294967040 }
 0x133   :  { %3284 = dma.done.wait [#allocation6], 2048  }
 0x134   :  { %3285 = vsyncadd [#allocation6], 4294965248 }
 0x135   :  { %3286 = dma.done.wait [#allocation9], 1088  }
 0x136   :  { %3287 = vsyncadd [#allocation9], 4294966208 }
 0x137   :  { %3288 = dma.done.wait [#allocation12], 128  }
 0x138   :  { %3289 = vsyncadd [#allocation12], 4294967168 }
 0x139   :  { %3290 = dma.done.wait [#allocation15], 272  }
 0x13a   :  { %3291 = vsyncadd [#allocation15], 4294967024 }
 0x13b   :  { %3292 = dma.done.wait [#allocation18], 32  }
 0x13c   :  { %3293 = vsyncadd [#allocation18], 4294967264 }
 0x13d   :  { %3294 = dma.done.wait [#allocation21], 272  }
 0x13e   :  { %3295 = vsyncadd [#allocation21], 4294967024 }
 0x13f   :  { %3296 = dma.done.wait [#allocation24], 272  }
 0x140   :  { %3297 = vsyncadd [#allocation24], 4294967024 }
 0x141   :  { %3298 = dma.done.wait [#allocation27], 32  }
 0x142   :  { %3299 = vsyncadd [#allocation27], 4294967264  ;;  %v3325_v0 = vmov 0.0   ;;  %vm3326_vm0 = vmmov 0   ;;  %v2816_v1 = vld [vmem:[#allocation7] sm:$0xff]   ;;  %v2817_v2 = vld [vmem:[#allocation7 + $0x8] sm:$0xff]  }
 0x143   :  { %2566 = vmatprep.subr.bf16.mxu1 %v3325_v0  ;;  %2558 = vmatprep.subr.bf16.mxu0 %v3325_v0  ;;  %v2818_v3 = vld [vmem:[#allocation5] sm:$0xff]   ;;  %v274_v4 = vld [vmem:[#allocation2] sm:$0xff]  ;;  %v275_v5 = vld [vmem:[#allocation2 + $0x8] sm:$0xff]  ;;  %vm300_vm1 = vcmask 261120   ;;  %vm479_vm2 = vcmask 64512   ;;  %vm599_vm3 = vcmask 1043456  }
 0x144   :  { %2570 = vmatprep.mubr.msk.bf16.mxu1 %vm3326_vm0, %v3325_v0  ;;  %2562 = vmatprep.mubr.msk.bf16.mxu0 %vm3326_vm0, %v3325_v0  ;;  %v2819_v6 = vld [vmem:[#allocation5 + $0x8] sm:$0xff]   ;;  %v3673_v7 = vpack.c.bf16 %v275_v5, %v274_v4  ;;  %v2820_v8 = vld [vmem:[#allocation8] sm:$0xff]   ;;  %s3327_s16 = smov [#allocation29]  }
 0x145   :  { %2567 = vmatpush3.bf16.msra.mxu1 %v2816_v1  ;;  %2559 = vmatpush3.bf16.msra.mxu0 %v2818_v3  ;;  %v2821_v9 = vld [vmem:[#allocation8 + $0x8] sm:$0xff]   ;;  %v2399_v10 = vld [vmem:[#allocation11] ss:$0 sm:$0xff]  ;;  %v2395_v15 = vld [vmem:[#allocation10] ss:$0 sm:$0xff]  ;;  %s2375_s10 = sshll.u32 %s3327_s16, 4  ;;  %s2376_s10 = int_to_ptr.vmem [resolvable:$true] %s2375_s10 }
 0x146   :  { %2568 = vmatprep.subr.bf16.mxu1 %v3325_v0  ;;  %2560 = vmatprep.subr.bf16.mxu0 %v3325_v0  ;;  %v2403_v27 = vld [vmem:[#allocation13] ss:$0 sm:$0xff]  ;;  %s3260_s26 = scalar_lea.vmem %s2376_s10, 256  ;;  %p3265_p11 = scmp.lt.s32.totalorder %s2376_s10, %s2376_s10 }
 0x147   :  { %p3261_p10 = scmp.ne.s32.totalorder %s2376_s10, %s3260_s26  ;;  %p3266_p12 = scmp.lt.s32.totalorder %s3260_s26, %s3260_s26 }
 0x149   :  { %2569 = vmatpush3.bf16.msra.mxu1 %v2817_v2  ;;  %2561 = vmatpush3.bf16.msra.mxu0 %v2819_v6  ;;  %v2822_v2 = vld [vmem:[#allocation7 + $0x10] sm:$0xff]   ;;  %v2823_v6 = vld [vmem:[#allocation7 + $0x18] sm:$0xff]   ;;  %p3267_p13 = por %p3266_p12, %p3265_p11 }
 0x14a   :  { %2582 = vmatprep.subr.bf16.mxu1 %v3325_v0  ;;  %2574 = vmatprep.subr.bf16.mxu0 %v3325_v0 }
 0x14b   :  { %p3268_p0 = pnand %p3267_p13, %p3261_p10 }
 0x14c   :  { %2571 = vmatmul.mubr.msk.bf16.vlgmr.msra.gmra.mrb[0].mxu1 %vm300_vm1, %v3673_v7  ;;  %2563 = vmatmul.mubr.msk.bf16.vlgmr.msra.gmra.mrb[0].mxu0 %vm300_vm1, %v3673_v7 }
 0x14d   :  { %2584 = vmatprep.mubr.msk.bf16.mxu1 %vm3326_vm0, %v3325_v0  ;;  %2575 = vmatpush3.bf16.msra.mxu0 %v2820_v8  ;;  %v2824_v8 = vld [vmem:[#allocation5 + $0x10] sm:$0xff]  }
 0x14e   :  { %2578 = vmatprep.mubr.msk.bf16.mxu0 %vm3326_vm0, %v3325_v0  ;;  %2576 = vmatprep.subr.bf16.mxu0 %v3325_v0 }
 0x151   :  { %2577 = vmatpush3.bf16.msra.mxu0 %v2821_v9 }
 0x152   :  { %2588 = vmatprep.subr.bf16.mxu0 %v3325_v0 }
 0x154   :  { %2579 = vmatmul.mubr.msk.bf16.vlgmr.msra.gmra.mrb[4].mxu0 %vm300_vm1, %v3673_v7 }
 0x155   :  { %2590 = vmatprep.mubr.msk.bf16.mxu0 %vm3326_vm0, %v3325_v0 }
 0x21f   :  { %v402_v11 = vpop.f32.mrb[0].mxu1  ;;  %v338_v16 = vpop.f32.mrb[0].mxu0 }
 0x220   :  { %v403_v12 = vadd.f32 %v2399_v10, %v402_v11  ;;  %v2572_v13 = vpop.f32.mrb[1].mxu1  ;;  %v2564_v20 = vpop.f32.mrb[1].mxu0  ;;  %v339_v24 = vadd.f32 %v2395_v15, %v338_v16  ;;  %v2826_v11 = vld [vmem:[#allocation8 + $0x10] sm:$0xff]  }
 0x221   :  { %v405_v14 = vpop.f32.mrb[2].mxu1  ;;  %v341_v21 = vpop.f32.mrb[2].mxu0 }
 0x222   :  { %v475_v17 = vpack.c.bf16 %v403_v12, %v403_v12  ;;  %v406_v18 = vadd.f32 %v2399_v10, %v405_v14  ;;  %v2573_v19 = vpop.f32.mrb[3].mxu1  ;;  %v2565_v25 = vpop.f32.mrb[3].mxu0  ;;  %v473_v28 = vpack.c.bf16 %v339_v24, %v339_v24  ;;  %v342_v29 = vadd.f32 %v2395_v15, %v341_v21  ;;  %v2825_v10 = vld [vmem:[#allocation5 + $0x18] sm:$0xff]   ;;  %v2415_v21 = vld [vmem:[#allocation11 + $0x1] ss:$0 sm:$0xff] }
 0x223   :  { %v2827_v12 = vld [vmem:[#allocation8 + $0x18] sm:$0xff]  }
 0x224   :  { %v484_v22 = vsel %vm479_vm2, %v475_v17, 0  ;;  %v476_v23 = vpack.c.bf16 %v406_v18, %v406_v18  ;;  %v474_v34 = vpack.c.bf16 %v342_v29, %v342_v29 }
 0x225   :  { %2583 = vmatpush3.bf16.xpose.msra.mxu1 %v484_v22 }
 0x226   :  { %v530_v26 = vsel %vm479_vm2, %v476_v23, 0  ;;  %2594 = vmatprep.subr.bf16.mxu1 %v3325_v0 }
 0x227   :  { %2589 = vmatpush3.bf16.xpose.msra.mxu0 %v530_v26  ;;  %v466_v30 = vpop.f32.mrb[4].mxu0 }
 0x228   :  { %2600 = vmatprep.subr.bf16.mxu0 %v3325_v0  ;;  %v467_v31 = vadd.f32 %v2403_v27, %v466_v30  ;;  %v2580_v32 = vpop.f32.mrb[5].mxu0 }
 0x229   :  { %v469_v33 = vpop.f32.mrb[6].mxu0 }
 0x22a   :  { %v477_v35 = vpack.c.bf16 %v467_v31, %v467_v31  ;;  %v470_v36 = vadd.f32 %v2403_v27, %v469_v33  ;;  %v2581_v37 = vpop.f32.mrb[7].mxu0  ;;  %v2411_v27 = vld [vmem:[#allocation10 + $0x1] ss:$0 sm:$0xff] }
 0x22c   :  { %2585 = vmatmul.mubr.msk.bf16.vlgmr.msra.gmra.mrb[4].mxu1 %vm479_vm2, %v473_v28  ;;  %v601_v38 = vsel %vm599_vm3, %v477_v35, 0  ;;  %v478_v39 = vpack.c.bf16 %v470_v36, %v470_v36 }
 0x22d   :  { %2596 = vmatprep.mubr.msk.bf16.mxu1 %vm3326_vm0, %v3325_v0  ;;  %2595 = vmatpush3.bf16.msra.mxu1 %v601_v38 }
 0x22e   :  { %2591 = vmatmul.mubr.msk.bf16.vlgmr.msra.gmra.mrb[8].mxu0 %vm479_vm2, %v474_v34  ;;  %v647_v40 = vsel %vm599_vm3, %v478_v39, 0  ;;  %2606 = vmatprep.subr.bf16.mxu1 %v3325_v0 }
 0x22f   :  { %2602 = vmatprep.mubr.msk.bf16.mxu0 %vm3326_vm0, %v3325_v0  ;;  %2601 = vmatpush3.bf16.msra.mxu0 %v647_v40 }
 0x230   :  { %2614 = vmatprep.subr.bf16.mxu0 %v3325_v0 }
 0x2ff   :  { %v520_v41 = vpop.f32.mrb[4].mxu1 }
 0x300   :  { %v2586_v42 = vpop.f32.mrb[5].mxu1  ;;  %v572_v50 = vsel %vm479_vm2, %v520_v41, -inf }
 0x301   :  { %v523_v43 = vpop.f32.mrb[6].mxu1  ;;  %v566_v44 = vpop.f32.mrb[8].mxu0  ;;  %v2419_v42 = vld [vmem:[#allocation13 + $0x1] ss:$0 sm:$0xff] }
 0x302   :  { %v2587_v45 = vpop.f32.mrb[7].mxu1  ;;  %v2592_v46 = vpop.f32.mrb[9].mxu0  ;;  %v575_v47 = vsel %vm479_vm2, %v566_v44, -inf }
 0x303   :  { %576 = vmax.xlane.f32.xlu0 %v575_v47  ;;  %v569_v48 = vpop.f32.mrb[10].mxu0 }
 0x304   :  { %v2593_v49 = vpop.f32.mrb[11].mxu0 }
 0x307   :  { %573 = vmax.xlane.f32.xlu0 %v572_v50 }
 0x390   :  { %v577_v51 = vpop.xlane.xlu0 %576 }
 0x391   :  { %v579_v52 = vsub.f32 %v566_v44, %v577_v51 }
 0x393   :  { %v582_v53 = vmul.f32 1.442695, %v579_v52 }
 0x394   :  { %v574_v54 = vpop.xlane.xlu0 %573 }
 0x395   :  { %2844 = vpow2.f32 %v582_v53  ;;  %v578_v55 = vsub.f32 %v520_v41, %v574_v54 }
 0x397   :  { %v580_v56 = vmul.f32 1.442695, %v578_v55 }
 0x399   :  { %2846 = vpow2.f32 %v580_v56 }
 0x39f   :  { %v2845_v57 = vpop.eup %2844 }
 0x3a0   :  { %v587_v58 = vsel %vm479_vm2, %v2845_v57, 0.0 }
 0x3a1   :  { %588 = vadd.xlane.f32.xlu1 %v587_v58 }
 0x3a3   :  { %v2847_v59 = vpop.eup %2846 }
 0x3a4   :  { %v584_v60 = vsel %vm479_vm2, %v2847_v59, 0.0 }
 0x3a5   :  { %585 = vadd.xlane.f32.xlu1 %v584_v60 }
 0x42e   :  { %v589_v61 = vpop.xlane.xlu1 %588 }
 0x42f   :  { %2848 = vrcp.f32 %v589_v61 }
 0x432   :  { %v586_v62 = vpop.xlane.xlu1 %585 }
 0x433   :  { %2850 = vrcp.f32 %v586_v62 }
 0x439   :  { %v2849_v63 = vpop.eup %2848 }
 0x43a   :  { %v593_v1 = vmul.f32 %v2849_v63, %v2845_v57 }
 0x43c   :  { %v595_v3 = vpack.c.bf16 %v593_v1, %v593_v1 }
 0x43d   :  { %v2851_v4 = vpop.eup %2850 }
 0x43e   :  { %v592_v5 = vmul.f32 %v2851_v4, %v2847_v59  ;;  %2603 = vmatmul.mubr.msk.bf16.vlgmr.msra.gmra.mrb[12].mxu0 %vm479_vm2, %v595_v3 }
 0x43f   :  { %2615 = vmatpush3.bf16.msra.mxu0 %v2822_v2  ;;  %2618 = vmatprep.mubr.msk.bf16.mxu0 %vm3326_vm0, %v3325_v0 }
 0x440   :  { %v594_v9 = vpack.c.bf16 %v592_v5, %v592_v5  ;;  %2616 = vmatprep.subr.bf16.mxu0 %v3325_v0 }
 0x442   :  { %2597 = vmatmul.mubr.msk.bf16.vlgmr.msra.gmra.mrb[8].mxu1 %vm479_vm2, %v594_v9 }
 0x443   :  { %2617 = vmatpush3.bf16.msra.mxu0 %v2823_v6  ;;  %2607 = vmatpush3.bf16.msra.mxu1 %v2824_v8 }
 0x444   :  { %2608 = vmatprep.subr.bf16.mxu1 %v3325_v0  ;;  %2610 = vmatprep.mubr.msk.bf16.mxu1 %vm3326_vm0, %v3325_v0 }
 0x445   :  { %2630 = vmatprep.subr.bf16.mxu0 %v3325_v0 }
 0x446   :  { %2619 = vmatmul.mubr.msk.bf16.vlgmr.msra.gmra.mrb[16].mxu0 %vm300_vm1, %v3673_v7 }
 0x447   :  { %2609 = vmatpush3.bf16.msra.mxu1 %v2825_v10  ;;  %2632 = vmatprep.mubr.msk.bf16.mxu0 %vm3326_vm0, %v3325_v0 }
 0x448   :  { %2622 = vmatprep.subr.bf16.mxu1 %v3325_v0 }
 0x44a   :  { %2611 = vmatmul.mubr.msk.bf16.vlgmr.msra.gmra.mrb[12].mxu1 %vm300_vm1, %v3673_v7 }
 0x44b   :  { %2626 = vmatprep.mubr.msk.bf16.mxu1 %vm3326_vm0, %v3325_v0  ;;  %2623 = vmatpush3.bf16.msra.mxu1 %v2826_v11 }
 0x44c   :  { %2624 = vmatprep.subr.bf16.mxu1 %v3325_v0 }
 0x44f   :  { %2625 = vmatpush3.bf16.msra.mxu1 %v2827_v12 }
 0x450   :  { %2636 = vmatprep.subr.bf16.mxu1 %v3325_v0 }
 0x452   :  { %2627 = vmatmul.mubr.msk.bf16.vlgmr.msra.gmra.mrb[16].mxu1 %vm300_vm1, %v3673_v7 }
 0x453   :  { %2638 = vmatprep.mubr.msk.bf16.mxu1 %vm3326_vm0, %v3325_v0 }
 0x511   :  { %v3734_v13 = vpop.f32.mrb[12].mxu0 }
 0x512   :  { %v2604_v14 = vpop.f32.mrb[13].mxu0 }
 0x513   :  { %v686_v15 = vpop.f32.mrb[14].mxu0 }
 0x514   :  { %v2605_v16 = vpop.f32.mrb[15].mxu0  ;;  %v1105_v15 = vld [vmem:[#allocation14 + $0x4] sm:$0xf] }
 0x515   :  { %v3736_v17 = vpop.f32.mrb[8].mxu1 }
 0x516   :  { %v689_v18 = vpack.c.bf16 %v3734_v13, %v3736_v17  ;;  %v2598_v19 = vpop.f32.mrb[9].mxu1 }
 0x517   :  { %v640_v20 = vpop.f32.mrb[10].mxu1 }
 0x518   :  { %v2599_v22 = vpop.f32.mrb[11].mxu1  ;;  %v690_v20 = vld [vmem:[#allocation14] sm:$0xf] }
 0x519   :  { %v816_v23 = vpop.f32.mrb[16].mxu0 }
 0x51a   :  { %v817_v24 = vadd.f32 %v2415_v21, %v816_v23  ;;  %v2620_v25 = vpop.f32.mrb[17].mxu0  ;;  %v1110_v23 = vsel %vm599_vm3, %v1105_v15, 0 }
 0x51b   :  { %v819_v26 = vpop.f32.mrb[18].mxu0  ;;  %v1157_v25 = vsel %vm599_vm3, %v690_v20, 0 }
 0x51c   :  { %v891_v28 = vpack.c.bf16 %v817_v24, %v817_v24  ;;  %v820_v29 = vadd.f32 %v2415_v21, %v819_v26  ;;  %v2621_v30 = vpop.f32.mrb[19].mxu0  ;;  %v2828_v26 = vld [vmem:[#allocation7 + $0x20] sm:$0xff]  }
 0x51d   :  { %v750_v31 = vpop.f32.mrb[12].mxu1 }
 0x51e   :  { %v899_v32 = vsel %vm479_vm2, %v891_v28, 0  ;;  %v892_v33 = vpack.c.bf16 %v820_v29, %v820_v29  ;;  %v751_v34 = vadd.f32 %v2411_v27, %v750_v31  ;;  %v2612_v35 = vpop.f32.mrb[13].mxu1  ;;  %v2830_v29 = vld [vmem:[#allocation5 + $0x20] sm:$0xff]  }
 0x51f   :  { %2631 = vmatpush3.bf16.xpose.msra.mxu0 %v899_v32  ;;  %v753_v36 = vpop.f32.mrb[14].mxu1  ;;  %v2831_v35 = vld [vmem:[#allocation5 + $0x28] sm:$0xff]  }
 0x520   :  { %v945_v37 = vsel %vm479_vm2, %v892_v33, 0  ;;  %v2613_v38 = vpop.f32.mrb[15].mxu1  ;;  %2642 = vmatprep.subr.bf16.mxu0 %v3325_v0  ;;  %v889_v39 = vpack.c.bf16 %v751_v34, %v751_v34  ;;  %v754_v40 = vadd.f32 %v2411_v27, %v753_v36  ;;  %v2829_v27 = vld [vmem:[#allocation7 + $0x28] sm:$0xff]  }
 0x521   :  { %2637 = vmatpush3.bf16.xpose.msra.mxu1 %v945_v37  ;;  %v2832_v37 = vld [vmem:[#allocation8 + $0x20] sm:$0xff]  }
 0x522   :  { %2648 = vmatprep.subr.bf16.mxu1 %v3325_v0  ;;  %v890_v41 = vpack.c.bf16 %v754_v40, %v754_v40 }
 0x525   :  { %v882_v43 = vpop.f32.mrb[16].mxu1 }
 0x526   :  { %2633 = vmatmul.mubr.msk.bf16.vlgmr.msra.gmra.mrb[20].mxu0 %vm479_vm2, %v889_v39  ;;  %v883_v44 = vadd.f32 %v2419_v42, %v882_v43  ;;  %v2628_v45 = vpop.f32.mrb[17].mxu1 }
 0x527   :  { %2644 = vmatprep.mubr.msk.bf16.mxu0 %vm3326_vm0, %v3325_v0  ;;  %v885_v46 = vpop.f32.mrb[18].mxu1 }
 0x528   :  { %2639 = vmatmul.mubr.msk.bf16.vlgmr.msra.gmra.mrb[20].mxu1 %vm479_vm2, %v890_v41  ;;  %v893_v47 = vpack.c.bf16 %v883_v44, %v883_v44  ;;  %v886_v48 = vadd.f32 %v2419_v42, %v885_v46  ;;  %v2629_v49 = vpop.f32.mrb[19].mxu1  ;;  %v2833_v41 = vld [vmem:[#allocation8 + $0x28] sm:$0xff]   ;;  %v2433_v42 = vld [vmem:[#allocation11 + $0x2] ss:$0 sm:$0xff] }
 0x529   :  { %2650 = vmatprep.mubr.msk.bf16.mxu1 %vm3326_vm0, %v3325_v0 }
 0x52a   :  { %v1015_v50 = vsel %vm599_vm3, %v893_v47, 0  ;;  %v894_v51 = vpack.c.bf16 %v886_v48, %v886_v48 }
 0x52b   :  { %2643 = vmatpush3.bf16.msra.mxu0 %v1015_v50 }
 0x52c   :  { %v1061_v52 = vsel %vm599_vm3, %v894_v51, 0  ;;  %2654 = vmatprep.subr.bf16.mxu0 %v3325_v0 }
 0x52d   :  { %2649 = vmatpush3.bf16.msra.mxu1 %v1061_v52 }
 0x52e   :  { %2660 = vmatprep.subr.bf16.mxu1 %v3325_v0 }
 0x5f9   :  { %v935_v53 = vpop.f32.mrb[20].mxu0 }
 0x5fa   :  { %v2634_v54 = vpop.f32.mrb[21].mxu0  ;;  %v987_v55 = vsel %vm479_vm2, %v935_v53, -inf }
 0x5fb   :  { %v981_v56 = vpop.f32.mrb[20].mxu1  ;;  %988 = vmax.xlane.f32.xlu0 %v987_v55  ;;  %v938_v57 = vpop.f32.mrb[22].mxu0 }
 0x5fc   :  { %v2635_v58 = vpop.f32.mrb[23].mxu0  ;;  %v2640_v59 = vpop.f32.mrb[21].mxu1  ;;  %v990_v60 = vsel %vm479_vm2, %v981_v56, -inf }
 0x5fd   :  { %991 = vmax.xlane.f32.xlu1 %v990_v60  ;;  %v984_v61 = vpop.f32.mrb[22].mxu1  ;;  %v2429_v59 = vld [vmem:[#allocation10 + $0x2] ss:$0 sm:$0xff] }
 0x5fe   :  { %v2641_v62 = vpop.f32.mrb[23].mxu1 }
 0x688   :  { %v989_v63 = vpop.xlane.xlu0 %988 }
 0x689   :  { %v993_v1 = vsub.f32 %v935_v53, %v989_v63 }
 0x68a   :  { %v992_v2 = vpop.xlane.xlu1 %991 }
 0x68b   :  { %v995_v3 = vmul.f32 1.442695, %v993_v1  ;;  %v994_v4 = vsub.f32 %v981_v56, %v992_v2 }
 0x68d   :  { %2852 = vpow2.f32 %v995_v3  ;;  %v997_v5 = vmul.f32 1.442695, %v994_v4 }
 0x68f   :  { %2854 = vpow2.f32 %v997_v5  ;;  %v2437_v5 = vld [vmem:[#allocation13 + $0x2] ss:$0 sm:$0xff] }
 0x697   :  { %v2853_v6 = vpop.eup %2852 }
 0x698   :  { %v999_v8 = vsel %vm479_vm2, %v2853_v6, 0.0 }
 0x699   :  { %v2855_v9 = vpop.eup %2854  ;;  %1000 = vadd.xlane.f32.xlu0 %v999_v8 }
 0x69a   :  { %v1002_v10 = vsel %vm479_vm2, %v2855_v9, 0.0 }
 0x69b   :  { %1003 = vadd.xlane.f32.xlu1 %v1002_v10 }
 0x726   :  { %v1001_v11 = vpop.xlane.xlu0 %1000 }
 0x727   :  { %2856 = vrcp.f32 %v1001_v11 }
 0x728   :  { %v1004_v12 = vpop.xlane.xlu1 %1003 }
 0x729   :  { %2858 = vrcp.f32 %v1004_v12 }
 0x731   :  { %v2857_v14 = vpop.eup %2856 }
 0x732   :  { %v1007_v16 = vmul.f32 %v2857_v14, %v2853_v6 }
 0x733   :  { %v2859_v19 = vpop.eup %2858 }
 0x734   :  { %v1008_v21 = vmul.f32 %v2859_v19, %v2855_v9  ;;  %v1009_v22 = vpack.c.bf16 %v1007_v16, %v1007_v16 }
 0x736   :  { %2645 = vmatmul.mubr.msk.bf16.vlgmr.msra.gmra.mrb[24].mxu0 %vm479_vm2, %v1009_v22  ;;  %v1010_v24 = vpack.c.bf16 %v1008_v21, %v1008_v21 }
 0x737   :  { %2655 = vmatpush3.bf16.msra.mxu0 %v1110_v23  ;;  %2656 = vmatprep.mubr.msk.bf16.mxu0 %vm3326_vm0, %v3325_v0 }
 0x738   :  { %2651 = vmatmul.mubr.msk.bf16.vlgmr.msra.gmra.mrb[24].mxu1 %vm479_vm2, %v1010_v24  ;;  %2666 = vmatprep.subr.bf16.mxu0 %v3325_v0 }
 0x739   :  { %2661 = vmatpush3.bf16.msra.mxu1 %v1157_v25  ;;  %2662 = vmatprep.mubr.msk.bf16.mxu1 %vm3326_vm0, %v3325_v0 }
 0x73a   :  { %2674 = vmatprep.subr.bf16.mxu1 %v3325_v0 }
 0x740   :  { %2663 = vmatmul.mubr.msk.bf16.vlgmr.msra.gmra.mrb[28].mxu1 %vm479_vm2, %v689_v18 }
 0x741   :  { %2675 = vmatpush3.bf16.msra.mxu1 %v2828_v26  ;;  %2678 = vmatprep.mubr.msk.bf16.mxu1 %vm3326_vm0, %v3325_v0 }
 0x742   :  { %2676 = vmatprep.subr.bf16.mxu1 %v3325_v0 }
 0x745   :  { %2677 = vmatpush3.bf16.msra.mxu1 %v2829_v27 }
 0x746   :  { %2690 = vmatprep.subr.bf16.mxu1 %v3325_v0 }
 0x748   :  { %2679 = vmatmul.mubr.msk.bf16.vlgmr.msra.gmra.mrb[32].mxu1 %vm300_vm1, %v3673_v7 }
 0x749   :  { %2692 = vmatprep.mubr.msk.bf16.mxu1 %vm3326_vm0, %v3325_v0 }
 0x809   :  { %v1051_v28 = vpop.f32.mrb[24].mxu0 }
 0x80a   :  { %v2646_v13 = vpop.f32.mrb[25].mxu0 }
 0x80b   :  { %v1054_v17 = vpop.f32.mrb[26].mxu0  ;;  %v1097_v18 = vpop.f32.mrb[24].mxu1 }
 0x80c   :  { %v1103_v30 = vpack.c.bf16 %v1097_v18, %v1051_v28  ;;  %v2647_v31 = vpop.f32.mrb[27].mxu0  ;;  %v2652_v32 = vpop.f32.mrb[25].mxu1 }
 0x80d   :  { %v1100_v33 = vpop.f32.mrb[26].mxu1 }
 0x80e   :  { %v2653_v34 = vpop.f32.mrb[27].mxu1  ;;  %2657 = vmatmul.mubr.msk.bf16.vlgmr.msra.gmra.mrb[28].mxu0 %vm479_vm2, %v1103_v30 }
 0x80f   :  { %2667 = vmatpush3.bf16.msra.mxu0 %v2830_v29  ;;  %2670 = vmatprep.mubr.msk.bf16.mxu0 %vm3326_vm0, %v3325_v0 }
 0x810   :  { %2668 = vmatprep.subr.bf16.mxu0 %v3325_v0 }
 0x813   :  { %v1193_v36 = vpop.f32.mrb[28].mxu1  ;;  %2669 = vmatpush3.bf16.msra.mxu0 %v2831_v35 }
 0x814   :  { %v2664_v38 = vpop.f32.mrb[29].mxu1  ;;  %2682 = vmatprep.subr.bf16.mxu0 %v3325_v0 }
 0x815   :  { %v1196_v39 = vpop.f32.mrb[30].mxu1 }
 0x816   :  { %v2665_v40 = vpop.f32.mrb[31].mxu1  ;;  %2671 = vmatmul.mubr.msk.bf16.vlgmr.msra.gmra.mrb[32].mxu0 %vm300_vm1, %v3673_v7 }
 0x817   :  { %2683 = vmatpush3.bf16.msra.mxu0 %v2832_v37  ;;  %2686 = vmatprep.mubr.msk.bf16.mxu0 %vm3326_vm0, %v3325_v0  ;;  %v1614_v40 = vld [vmem:[#allocation14 + $0x8] sm:$0xf] }
 0x818   :  { %2684 = vmatprep.subr.bf16.mxu0 %v3325_v0 }
 0x81b   :  { %v1325_v43 = vpop.f32.mrb[32].mxu1  ;;  %2685 = vmatpush3.bf16.msra.mxu0 %v2833_v41 }
 0x81c   :  { %v1326_v44 = vadd.f32 %v2433_v42, %v1325_v43  ;;  %v2680_v45 = vpop.f32.mrb[33].mxu1  ;;  %2696 = vmatprep.subr.bf16.mxu0 %v3325_v0 }
 0x81d   :  { %v1328_v46 = vpop.f32.mrb[34].mxu1  ;;  %v1619_v45 = vsel %vm599_vm3, %v1614_v40, 0 }
 0x81e   :  { %v1400_v47 = vpack.c.bf16 %v1326_v44, %v1326_v44  ;;  %v1329_v48 = vadd.f32 %v2433_v42, %v1328_v46  ;;  %v2681_v49 = vpop.f32.mrb[35].mxu1  ;;  %2687 = vmatmul.mubr.msk.bf16.vlgmr.msra.gmra.mrb[36].mxu0 %vm300_vm1, %v3673_v7 }
 0x81f   :  { %2698 = vmatprep.mubr.msk.bf16.mxu0 %vm3326_vm0, %v3325_v0 }
 0x820   :  { %v1408_v50 = vsel %vm479_vm2, %v1400_v47, 0  ;;  %v1401_v51 = vpack.c.bf16 %v1329_v48, %v1329_v48  ;;  %v2836_v47 = vld [vmem:[#allocation5 + $0x30] sm:$0xff]   ;;  %v2837_v48 = vld [vmem:[#allocation5 + $0x38] sm:$0xff]  }
 0x821   :  { %2691 = vmatpush3.bf16.xpose.msra.mxu1 %v1408_v50 }
 0x822   :  { %v1454_v52 = vsel %vm479_vm2, %v1401_v51, 0  ;;  %2702 = vmatprep.subr.bf16.mxu1 %v3325_v0 }
 0x824   :  { %2697 = vmatpush3.bf16.xpose.msra.mxu0 %v1454_v52 }
 0x825   :  { %2708 = vmatprep.subr.bf16.mxu0 %v3325_v0 }
 0x8e1   :  { %v1146_v53 = vpop.f32.mrb[28].mxu0 }
 0x8e2   :  { %v3799_v54 = vadd.f32 %v1193_v36, %v1146_v53  ;;  %v2658_v55 = vpop.f32.mrb[29].mxu0  ;;  %v2834_v53 = vld [vmem:[#allocation7 + $0x30] sm:$0xff]  }
 0x8e3   :  { %v1149_v56 = vpop.f32.mrb[30].mxu0 }
 0x8e4   :  { %v3801_v57 = vadd.f32 %v1196_v39, %v1149_v56  ;;  %v2659_v58 = vpop.f32.mrb[31].mxu0 }
 0x8e9   :  { %v1259_v60 = vpop.f32.mrb[32].mxu0 }
 0x8ea   :  { %v1260_v61 = vadd.f32 %v2429_v59, %v1259_v60  ;;  %v2672_v62 = vpop.f32.mrb[33].mxu0 }
 0x8eb   :  { %v1262_v63 = vpop.f32.mrb[34].mxu0  ;;  %v2838_v62 = vld [vmem:[#allocation8 + $0x30] sm:$0xff]  }
 0x8ec   :  { %v1398_v1 = vpack.c.bf16 %v1260_v61, %v1260_v61  ;;  %v1263_v2 = vadd.f32 %v2429_v59, %v1262_v63  ;;  %v2673_v3 = vpop.f32.mrb[35].mxu0  ;;  %v2835_v61 = vld [vmem:[#allocation7 + $0x38] sm:$0xff]  }
 0x8ed   :  { %v2839_v63 = vld [vmem:[#allocation8 + $0x38] sm:$0xff]  }
 0x8ee   :  { %v1399_v4 = vpack.c.bf16 %v1263_v2, %v1263_v2  ;;  %2693 = vmatmul.mubr.msk.bf16.vlgmr.msra.gmra.mrb[36].mxu1 %vm479_vm2, %v1398_v1 }
 0x8ef   :  { %2704 = vmatprep.mubr.msk.bf16.mxu1 %vm3326_vm0, %v3325_v0 }
 0x8f0   :  { %2699 = vmatmul.mubr.msk.bf16.vlgmr.msra.gmra.mrb[40].mxu0 %vm479_vm2, %v1399_v4 }
 0x8f1   :  { %v1391_v6 = vpop.f32.mrb[36].mxu0  ;;  %2710 = vmatprep.mubr.msk.bf16.mxu0 %vm3326_vm0, %v3325_v0 }
 0x8f2   :  { %v1392_v8 = vadd.f32 %v2437_v5, %v1391_v6  ;;  %v2688_v9 = vpop.f32.mrb[37].mxu0 }
 0x8f3   :  { %v1394_v10 = vpop.f32.mrb[38].mxu0 }
 0x8f4   :  { %v1402_v11 = vpack.c.bf16 %v1392_v8, %v1392_v8  ;;  %v1395_v12 = vadd.f32 %v2437_v5, %v1394_v10  ;;  %v2689_v14 = vpop.f32.mrb[39].mxu0 }
 0x8f6   :  { %v1524_v15 = vsel %vm599_vm3, %v1402_v11, 0  ;;  %v1403_v16 = vpack.c.bf16 %v1395_v12, %v1395_v12  ;;  %v2450_v12 = vld [vmem:[#allocation11 + $0x3] ss:$0 sm:$0xff] }
 0x8f7   :  { %2703 = vmatpush3.bf16.msra.mxu1 %v1524_v15 }
 0x8f8   :  { %v1570_v19 = vsel %vm599_vm3, %v1403_v16, 0  ;;  %2714 = vmatprep.subr.bf16.mxu1 %v3325_v0 }
 0x8f9   :  { %2709 = vmatpush3.bf16.msra.mxu0 %v1570_v19  ;;  %v2446_v19 = vld [vmem:[#allocation10 + $0x3] ss:$0 sm:$0xff] }
 0x8fa   :  { %2720 = vmatprep.subr.bf16.mxu0 %v3325_v0 }
 0x9c1   :  { %v1444_v20 = vpop.f32.mrb[36].mxu1 }
 0x9c2   :  { %v2694_v21 = vpop.f32.mrb[37].mxu1  ;;  %v1496_v22 = vsel %vm479_vm2, %v1444_v20, -inf }
 0x9c3   :  { %1497 = vmax.xlane.f32.xlu0 %v1496_v22  ;;  %v1447_v23 = vpop.f32.mrb[38].mxu1  ;;  %v1490_v24 = vpop.f32.mrb[40].mxu0 }
 0x9c4   :  { %v2695_v25 = vpop.f32.mrb[39].mxu1  ;;  %v2700_v26 = vpop.f32.mrb[41].mxu0  ;;  %v1499_v27 = vsel %vm479_vm2, %v1490_v24, -inf }
 0x9c5   :  { %1500 = vmax.xlane.f32.xlu1 %v1499_v27  ;;  %v1493_v28 = vpop.f32.mrb[42].mxu0 }
 0x9c6   :  { %v2701_v13 = vpop.f32.mrb[43].mxu0  ;;  %v2454_v28 = vld [vmem:[#allocation13 + $0x3] ss:$0 sm:$0xff] }
 0xa50   :  { %v1498_v17 = vpop.xlane.xlu0 %1497 }
 0xa51   :  { %v1502_v18 = vsub.f32 %v1444_v20, %v1498_v17 }
 0xa52   :  { %v1501_v29 = vpop.xlane.xlu1 %1500 }
 0xa53   :  { %v1504_v30 = vmul.f32 1.442695, %v1502_v18  ;;  %v1503_v31 = vsub.f32 %v1490_v24, %v1501_v29 }
 0xa55   :  { %2860 = vpow2.f32 %v1504_v30  ;;  %v1506_v32 = vmul.f32 1.442695, %v1503_v31 }
 0xa57   :  { %2862 = vpow2.f32 %v1506_v32 }
 0xa5f   :  { %v2861_v33 = vpop.eup %2860 }
 0xa60   :  { %v1508_v34 = vsel %vm479_vm2, %v2861_v33, 0.0 }
 0xa61   :  { %v2863_v35 = vpop.eup %2862  ;;  %1509 = vadd.xlane.f32.xlu0 %v1508_v34 }
 0xa62   :  { %v1511_v36 = vsel %vm479_vm2, %v2863_v35, 0.0 }
 0xa63   :  { %1512 = vadd.xlane.f32.xlu1 %v1511_v36 }
 0xaee   :  { %v1510_v37 = vpop.xlane.xlu0 %1509 }
 0xaef   :  { %2864 = vrcp.f32 %v1510_v37 }
 0xaf0   :  { %v1513_v38 = vpop.xlane.xlu1 %1512 }
 0xaf1   :  { %2866 = vrcp.f32 %v1513_v38 }
 0xaf9   :  { %v2865_v39 = vpop.eup %2864 }
 0xafa   :  { %v1516_v41 = vmul.f32 %v2865_v39, %v2861_v33 }
 0xafb   :  { %v2867_v42 = vpop.eup %2866 }
 0xafc   :  { %v1517_v43 = vmul.f32 %v2867_v42, %v2863_v35  ;;  %v1518_v44 = vpack.c.bf16 %v1516_v41, %v1516_v41 }
 0xafe   :  { %2705 = vmatmul.mubr.msk.bf16.vlgmr.msra.gmra.mrb[40].mxu1 %vm479_vm2, %v1518_v44  ;;  %v1519_v46 = vpack.c.bf16 %v1517_v43, %v1517_v43 }
 0xaff   :  { %2715 = vmatpush3.bf16.msra.mxu1 %v1619_v45  ;;  %2716 = vmatprep.mubr.msk.bf16.mxu1 %vm3326_vm0, %v3325_v0 }
 0xb00   :  { %2711 = vmatmul.mubr.msk.bf16.vlgmr.msra.gmra.mrb[44].mxu0 %vm479_vm2, %v1519_v46  ;;  %2728 = vmatprep.subr.bf16.mxu1 %v3325_v0 }
 0xb01   :  { %2724 = vmatprep.mubr.msk.bf16.mxu0 %vm3326_vm0, %v3325_v0  ;;  %2721 = vmatpush3.bf16.msra.mxu0 %v2836_v47 }
 0xb02   :  { %2722 = vmatprep.subr.bf16.mxu0 %v3325_v0 }
 0xb05   :  { %2723 = vmatpush3.bf16.msra.mxu0 %v2837_v48 }
 0xb06   :  { %2736 = vmatprep.subr.bf16.mxu0 %v3325_v0 }
 0xb08   :  { %2725 = vmatmul.mubr.msk.bf16.vlgmr.msra.gmra.mrb[48].mxu0 %vm300_vm1, %v3673_v7 }
 0xb09   :  { %2740 = vmatprep.mubr.msk.bf16.mxu0 %vm3326_vm0, %v3325_v0  ;;  %2737 = vmatpush3.bf16.msra.mxu0 %v2838_v62 }
 0xb0a   :  { %2738 = vmatprep.subr.bf16.mxu0 %v3325_v0 }
 0xb0d   :  { %2739 = vmatpush3.bf16.msra.mxu0 %v2839_v63 }
 0xb0e   :  { %2750 = vmatprep.subr.bf16.mxu0 %v3325_v0 }
 0xb10   :  { %2741 = vmatmul.mubr.msk.bf16.vlgmr.msra.gmra.mrb[52].mxu0 %vm300_vm1, %v3673_v7 }
 0xb11   :  { %2752 = vmatprep.mubr.msk.bf16.mxu0 %vm3326_vm0, %v3325_v0 }
 0xbd1   :  { %v1560_v49 = vpop.f32.mrb[40].mxu1 }
 0xbd2   :  { %v2706_v50 = vpop.f32.mrb[41].mxu1 }
 0xbd3   :  { %v1563_v51 = vpop.f32.mrb[42].mxu1  ;;  %v1606_v52 = vpop.f32.mrb[44].mxu0 }
 0xbd4   :  { %v1612_v55 = vpack.c.bf16 %v1606_v52, %v1560_v49  ;;  %v2707_v56 = vpop.f32.mrb[43].mxu1  ;;  %v2712_v58 = vpop.f32.mrb[45].mxu0 }
 0xbd5   :  { %v1609_v59 = vpop.f32.mrb[46].mxu0 }
 0xbd6   :  { %v2713_v60 = vpop.f32.mrb[47].mxu0  ;;  %2717 = vmatmul.mubr.msk.bf16.vlgmr.msra.gmra.mrb[44].mxu1 %vm479_vm2, %v1612_v55 }
 0xbd7   :  { %2729 = vmatpush3.bf16.msra.mxu1 %v2834_v53  ;;  %2732 = vmatprep.mubr.msk.bf16.mxu1 %vm3326_vm0, %v3325_v0 }
 0xbd8   :  { %2730 = vmatprep.subr.bf16.mxu1 %v3325_v0 }
 0xbdb   :  { %2731 = vmatpush3.bf16.msra.mxu1 %v2835_v61  ;;  %v1723_v1 = vpop.f32.mrb[48].mxu0  ;;  %v2078_v61 = vld [vmem:[#allocation14 + $0xc] sm:$0xf] }
 0xbdc   :  { %2744 = vmatprep.subr.bf16.mxu1 %v3325_v0  ;;  %v2726_v2 = vpop.f32.mrb[49].mxu0 }
 0xbdd   :  { %v1726_v3 = vpop.f32.mrb[50].mxu0 }
 0xbde   :  { %2733 = vmatmul.mubr.msk.bf16.vlgmr.msra.gmra.mrb[48].mxu1 %vm300_vm1, %v3673_v7  ;;  %v2727_v4 = vpop.f32.mrb[51].mxu0  ;;  %v1727_v26 = vadd.f32 %v2446_v19, %v1726_v3  ;;  %v2083_v3 = vsel %vm599_vm3, %v2078_v61, 0 }
 0xbdf   :  { %2746 = vmatprep.mubr.msk.bf16.mxu1 %vm3326_vm0, %v3325_v0 }
 0xbe0   :  { %v1863_v27 = vpack.c.bf16 %v1727_v26, %v1727_v26  ;;  %v2884_v26 = vld [vmem:[#allocation2] sm:$0xff] }
 0xbe3   :  { %v1855_v13 = vpop.f32.mrb[52].mxu0 }
 0xbe4   :  { %v1856_v17 = vadd.f32 %v2454_v28, %v1855_v13  ;;  %v2742_v18 = vpop.f32.mrb[53].mxu0  ;;  %v2885_v13 = vld [vmem:[#allocation2 + $0x8] sm:$0xff] }
 0xbe5   :  { %v1858_v29 = vpop.f32.mrb[54].mxu0 }
 0xbe6   :  { %v1866_v30 = vpack.c.bf16 %v1856_v17, %v1856_v17  ;;  %v1859_v31 = vadd.f32 %v2454_v28, %v1858_v29  ;;  %v2743_v32 = vpop.f32.mrb[55].mxu0 }
 0xbe8   :  { %v1988_v33 = vsel %vm599_vm3, %v1866_v30, 0  ;;  %v1867_v34 = vpack.c.bf16 %v1859_v31, %v1859_v31 }
 0xbea   :  { %v2034_v35 = vsel %vm599_vm3, %v1867_v34, 0 }
 0xca9   :  { %v1655_v5 = vpop.f32.mrb[44].mxu1 }
 0xcaa   :  { %v3847_v6 = vadd.f32 %v1655_v5, %v3799_v54  ;;  %v2718_v8 = vpop.f32.mrb[45].mxu1  ;;  %v1724_v54 = vadd.f32 %v2446_v19, %v1723_v1 }
 0xcab   :  { %v1658_v9 = vpop.f32.mrb[46].mxu1 }
 0xcac   :  { %v3850_v10 = vadd.f32 %v1658_v9, %v3801_v57  ;;  %v2719_v11 = vpop.f32.mrb[47].mxu1  ;;  %v1862_v57 = vpack.c.bf16 %v1724_v54, %v1724_v54 }
 0xcb1   :  { %v1789_v14 = vpop.f32.mrb[48].mxu1 }
 0xcb2   :  { %v1790_v7 = vadd.f32 %v2450_v12, %v1789_v14  ;;  %v2734_v15 = vpop.f32.mrb[49].mxu1 }
 0xcb3   :  { %v1792_v16 = vpop.f32.mrb[50].mxu1 }
 0xcb4   :  { %v1864_v20 = vpack.c.bf16 %v1790_v7, %v1790_v7  ;;  %v1793_v21 = vadd.f32 %v2450_v12, %v1792_v16  ;;  %v2735_v22 = vpop.f32.mrb[51].mxu1 }
 0xcb6   :  { %v1872_v23 = vsel %vm479_vm2, %v1864_v20, 0  ;;  %v1865_v24 = vpack.c.bf16 %v1793_v21, %v1793_v21  ;;  %v2463_v20 = vld [vmem:[#allocation16] ss:$0 sm:$0xff] }
 0xcb7   :  { %2745 = vmatpush3.bf16.xpose.msra.mxu1 %v1872_v23 }
 0xcb8   :  { %v1918_v25 = vsel %vm479_vm2, %v1865_v24, 0  ;;  %2756 = vmatprep.subr.bf16.mxu1 %v3325_v0 }
 0xcb9   :  { %2751 = vmatpush3.bf16.xpose.msra.mxu0 %v1918_v25 }
 0xcba   :  { %2762 = vmatprep.subr.bf16.mxu0 %v3325_v0 }
 0xcbe   :  { %2747 = vmatmul.mubr.msk.bf16.vlgmr.msra.gmra.mrb[52].mxu1 %vm479_vm2, %v1862_v57 }
 0xcbf   :  { %2758 = vmatprep.mubr.msk.bf16.mxu1 %vm3326_vm0, %v3325_v0  ;;  %2757 = vmatpush3.bf16.msra.mxu1 %v1988_v33 }
 0xcc0   :  { %2753 = vmatmul.mubr.msk.bf16.vlgmr.msra.gmra.mrb[56].mxu0 %vm479_vm2, %v1863_v27  ;;  %2768 = vmatprep.subr.bf16.mxu1 %v3325_v0 }
 0xcc1   :  { %2764 = vmatprep.mubr.msk.bf16.mxu0 %vm3326_vm0, %v3325_v0  ;;  %2763 = vmatpush3.bf16.msra.mxu0 %v2034_v35 }
 0xcc2   :  { %2774 = vmatprep.subr.bf16.mxu0 %v3325_v0 }
 0xd91   :  { %v1908_v36 = vpop.f32.mrb[52].mxu1 }
 0xd92   :  { %v2748_v37 = vpop.f32.mrb[53].mxu1  ;;  %v1960_v38 = vsel %vm479_vm2, %v1908_v36, -inf }
 0xd93   :  { %1961 = vmax.xlane.f32.xlu0 %v1960_v38  ;;  %v1911_v39 = vpop.f32.mrb[54].mxu1  ;;  %v1954_v40 = vpop.f32.mrb[56].mxu0  ;;  %v2840_v37 = vld [vmem:[#allocation20] sm:$0xff]   ;;  %v2841_v38 = vld [vmem:[#allocation20 + $0x8] sm:$0xff]  }
 0xd94   :  { %v2749_v41 = vpop.f32.mrb[55].mxu1  ;;  %v2754_v42 = vpop.f32.mrb[57].mxu0  ;;  %v1963_v43 = vsel %vm479_vm2, %v1954_v40, -inf }
 0xd95   :  { %1964 = vmax.xlane.f32.xlu1 %v1963_v43  ;;  %v1957_v44 = vpop.f32.mrb[58].mxu0 }
 0xd96   :  { %v2755_v45 = vpop.f32.mrb[59].mxu0 }
 0xe20   :  { %v1962_v46 = vpop.xlane.xlu0 %1961 }
 0xe21   :  { %v1966_v47 = vsub.f32 %v1908_v36, %v1962_v46  ;;  %v2464_v46 = vld [vmem:[#allocation17] ss:$0 sm:$0xff] }
 0xe22   :  { %v1965_v48 = vpop.xlane.xlu1 %1964 }
 0xe23   :  { %v1968_v49 = vmul.f32 1.442695, %v1966_v47  ;;  %v1967_v50 = vsub.f32 %v1954_v40, %v1965_v48 }
 0xe25   :  { %2868 = vpow2.f32 %v1968_v49  ;;  %v1970_v51 = vmul.f32 1.442695, %v1967_v50 }
 0xe27   :  { %2870 = vpow2.f32 %v1970_v51  ;;  %v2465_v51 = vld [vmem:[#allocation19] ss:$0 sm:$0xff] }
 0xe2f   :  { %v2869_v52 = vpop.eup %2868 }
 0xe30   :  { %v1972_v53 = vsel %vm479_vm2, %v2869_v52, 0.0 }
 0xe31   :  { %v2871_v55 = vpop.eup %2870  ;;  %1973 = vadd.xlane.f32.xlu0 %v1972_v53 }
 0xe32   :  { %v1975_v56 = vsel %vm479_vm2, %v2871_v55, 0.0 }
 0xe33   :  { %1976 = vadd.xlane.f32.xlu1 %v1975_v56 }
 0xebe   :  { %v1974_v58 = vpop.xlane.xlu0 %1973 }
 0xebf   :  { %2872 = vrcp.f32 %v1974_v58  ;;  %v2842_v58 = vld [vmem:[#allocation23] sm:$0xff]  }
 0xec0   :  { %v1977_v59 = vpop.xlane.xlu1 %1976 }
 0xec1   :  { %2874 = vrcp.f32 %v1977_v59  ;;  %v2843_v59 = vld [vmem:[#allocation23 + $0x8] sm:$0xff]  }
 0xec9   :  { %v2873_v60 = vpop.eup %2872 }
 0xeca   :  { %v1980_v62 = vmul.f32 %v2873_v60, %v2869_v52  ;;  %v2466_v60 = vld [vmem:[#allocation22] ss:$0 sm:$0xff] }
 0xecb   :  { %v2875_v63 = vpop.eup %2874 }
 0xecc   :  { %v1981_v1 = vmul.f32 %v2875_v63, %v2871_v55  ;;  %v1982_v2 = vpack.c.bf16 %v1980_v62, %v1980_v62 }
 0xece   :  { %2759 = vmatmul.mubr.msk.bf16.vlgmr.msra.gmra.mrb[56].mxu1 %vm479_vm2, %v1982_v2  ;;  %v1983_v4 = vpack.c.bf16 %v1981_v1, %v1981_v1 }
 0xecf   :  { %2769 = vmatpush3.bf16.msra.mxu1 %v2083_v3  ;;  %2770 = vmatprep.mubr.msk.bf16.mxu1 %vm3326_vm0, %v3325_v0 }
 0xed0   :  { %2765 = vmatmul.mubr.msk.bf16.vlgmr.msra.gmra.mrb[60].mxu0 %vm479_vm2, %v1983_v4  ;;  %2782 = vmatprep.subr.bf16.mxu1 %v3325_v0 }
 0xed1   :  { %2778 = vmatprep.mubr.msk.bf16.mxu0 %vm3326_vm0, %v3325_v0  ;;  %2775 = vmatpush3.bf16.msra.mxu0 %v2840_v37 }
 0xed2   :  { %2776 = vmatprep.subr.bf16.mxu0 %v3325_v0 }
 0xed5   :  { %2777 = vmatpush3.bf16.msra.mxu0 %v2841_v38 }
 0xfa1   :  { %v2024_v5 = vpop.f32.mrb[56].mxu1 }
 0xfa2   :  { %v2760_v8 = vpop.f32.mrb[57].mxu1 }
 0xfa3   :  { %v2027_v9 = vpop.f32.mrb[58].mxu1  ;;  %v2070_v11 = vpop.f32.mrb[60].mxu0 }
 0xfa4   :  { %v2076_v12 = vpack.c.bf16 %v2070_v11, %v2024_v5  ;;  %v2761_v14 = vpop.f32.mrb[59].mxu1  ;;  %v2766_v7 = vpop.f32.mrb[61].mxu0  ;;  %v2470_v9 = vld [vmem:[#allocation25] ss:$0 sm:$0xff] }
 0xfa5   :  { %v2073_v15 = vpop.f32.mrb[62].mxu0 }
 0xfa6   :  { %v2767_v16 = vpop.f32.mrb[63].mxu0  ;;  %2771 = vmatmul.mubr.msk.bf16.vlgmr.msra.gmra.mrb[60].mxu1 %vm479_vm2, %v2076_v12 }
 0xfa7   :  { %2786 = vmatprep.mubr.msk.bf16.mxu1 %vm3326_vm0, %v3325_v0  ;;  %2783 = vmatpush3.bf16.msra.mxu1 %v2842_v58 }
 0xfa8   :  { %2784 = vmatprep.subr.bf16.mxu1 %v3325_v0 }
 0xfab   :  { %2785 = vmatpush3.bf16.msra.mxu1 %v2843_v59 }
0x1079   :  { %v2119_v19 = vpop.f32.mrb[60].mxu1 }
0x107a   :  { %v2126_v21 = vadd.f32 %v2119_v19, %v3847_v6  ;;  %v2772_v22 = vpop.f32.mrb[61].mxu1 }
0x107b   :  { %v2122_v23 = vpop.f32.mrb[62].mxu1 }
0x107c   :  { %v2135_v24 = vadd.f32 %v2463_v20, %v2126_v21  ;;  %v2127_v54 = vadd.f32 %v2122_v23, %v3850_v10  ;;  %v2773_v25 = vpop.f32.mrb[63].mxu1 }
0x107e   :  { %v2136_v57 = vadd.f32 %v2463_v20, %v2127_v54  ;;  %v2137_v27 = vadd.f32 %v2884_v26, %v2135_v24 }
0x1080   :  { %v2141_v28 = vsel %vm300_vm1, %v2137_v27, 0.0  ;;  %v2138_v17 = vadd.f32 %v2885_v13, %v2136_v57 }
0x1081   :  { %2142 = vadd.xlane.f32.xlu0 %v2141_v28 }
0x1082   :  { %v2144_v18 = vsel %vm300_vm1, %v2138_v17, 0.0 }
0x1083   :  { %2145 = vadd.xlane.f32.xlu1 %v2144_v18 }
0x110e   :  { %v2143_v29 = vpop.xlane.xlu0 %2142 }
0x110f   :  { %v2148_v30 = vmul.f32 0.03125, %v2143_v29 }
0x1110   :  { %v2146_v6 = vpop.xlane.xlu1 %2145 }
0x1111   :  { %v2150_v31 = vsub.f32 %v2137_v27, %v2148_v30  ;;  %v2149_v32 = vmul.f32 0.03125, %v2146_v6 }
0x1113   :  { %v2151_v33 = vsub.f32 %v2138_v17, %v2149_v32  ;;  %v2152_v34 = vmul.f32 %v2150_v31, %v2150_v31 }
0x1115   :  { %v2154_v10 = vsel %vm300_vm1, %v2152_v34, 0.0  ;;  %v2153_v35 = vmul.f32 %v2151_v33, %v2151_v33 }
0x1116   :  { %2155 = vadd.xlane.f32.xlu0 %v2154_v10 }
0x1117   :  { %v2157_v36 = vsel %vm300_vm1, %v2153_v35, 0.0  ;;  %v2475_v35 = vld [vmem:[#allocation28] ss:$0 sm:$0xff] }
0x1118   :  { %2158 = vadd.xlane.f32.xlu1 %v2157_v36 }
0x11a3   :  { %v2156_v39 = vpop.xlane.xlu0 %2155 }
0x11a4   :  { %v2160_v40 = vmul.f32 0.03125, %v2156_v39 }
0x11a5   :  { %v2159_v41 = vpop.xlane.xlu1 %2158 }
0x11a6   :  { %v2162_v42 = vadd.f32 1e-06, %v2160_v40  ;;  %v2161_v43 = vmul.f32 0.03125, %v2159_v41 }
0x11a8   :  { %2876 = vrsqrt.f32 %v2162_v42  ;;  %v2163_v44 = vadd.f32 1e-06, %v2161_v43 }
0x11aa   :  { %2878 = vrsqrt.f32 %v2163_v44 }
0x11b2   :  { %v2877_v45 = vpop.eup %2876 }
0x11b3   :  { %v2166_v47 = vmul.f32 %v2877_v45, %v2150_v31 }
0x11b4   :  { %v2879_v48 = vpop.eup %2878 }
0x11b5   :  { %v2174_v49 = vmul.f32 %v2464_v46, %v2166_v47  ;;  %v2167_v50 = vmul.f32 %v2879_v48, %v2151_v33  ;;  %v2474_v33 = vld [vmem:[#allocation26] ss:$0 sm:$0xff] }
0x11b7   :  { %v2175_v52 = vmul.f32 %v2464_v46, %v2167_v50  ;;  %v2182_v53 = vadd.f32 %v2465_v51, %v2174_v49 }
0x11b9   :  { %v2183_v55 = vadd.f32 %v2465_v51, %v2175_v52 }
0x11bb   :  { %v2184_v56 = vpack.c.bf16 %v2183_v55, %v2182_v53 }
0x11bd   :  { %2779 = vmatmul.mubr.msk.bf16.vlgmr.msra.gmra.mrb[64].mxu0 %vm300_vm1, %v2184_v56 }
0x1290   :  { %v2245_v61 = vpop.f32.mrb[64].mxu0 }
0x1291   :  { %v2246_v62 = vadd.f32 %v2466_v60, %v2245_v61  ;;  %v2780_v63 = vpop.f32.mrb[65].mxu0 }
0x1292   :  { %v2248_v1 = vpop.f32.mrb[66].mxu0 }
0x1293   :  { %v2249_v2 = vadd.f32 %v2466_v60, %v2248_v1  ;;  %v2781_v3 = vpop.f32.mrb[67].mxu0  ;;  %v2252_v4 = vmax.f32 %v2246_v62, 0.0 }
0x1295   :  { %v2253_v5 = vmax.f32 %v2249_v2, 0.0 }
0x1297   :  { %v2254_v8 = vpack.c.bf16 %v2253_v5, %v2252_v4 }
0x1299   :  { %2787 = vmatmul.mubr.msk.bf16.vlgmr.msra.gmra.mrb[64].mxu1 %vm300_vm1, %v2254_v8 }
0x136c   :  { %v2315_v11 = vpop.f32.mrb[64].mxu1 }
0x136d   :  { %v2316_v12 = vadd.f32 %v2470_v9, %v2315_v11  ;;  %v2788_v14 = vpop.f32.mrb[65].mxu1 }
0x136e   :  { %v2318_v7 = vpop.f32.mrb[66].mxu1 }
0x136f   :  { %v2319_v0 = vadd.f32 %v2470_v9, %v2318_v7  ;;  %v2789_v15 = vpop.f32.mrb[67].mxu1  ;;  %v2322_v16 = vadd.f32 %v2316_v12, %v2182_v53 }
0x1371   :  { %v2326_v19 = vsel %vm300_vm1, %v2322_v16, 0.0  ;;  %v2323_v20 = vadd.f32 %v2319_v0, %v2183_v55 }
0x1372   :  { %2327 = vadd.xlane.f32.xlu0 %v2326_v19 }
0x1373   :  { %v2329_v21 = vsel %vm300_vm1, %v2323_v20, 0.0 }
0x1374   :  { %2330 = vadd.xlane.f32.xlu1 %v2329_v21 }
0x13ff   :  { %v2328_v22 = vpop.xlane.xlu0 %2327 }
0x1400   :  { %v2332_v23 = vmul.f32 0.03125, %v2328_v22 }
0x1401   :  { %v2331_v24 = vpop.xlane.xlu1 %2330 }
0x1402   :  { %v2334_v54 = vsub.f32 %v2322_v16, %v2332_v23  ;;  %v2333_v25 = vmul.f32 0.03125, %v2331_v24 }
0x1404   :  { %v2335_v57 = vsub.f32 %v2323_v20, %v2333_v25  ;;  %v2336_v26 = vmul.f32 %v2334_v54, %v2334_v54 }
0x1406   :  { %v2338_v27 = vsel %vm300_vm1, %v2336_v26, 0.0  ;;  %v2337_v28 = vmul.f32 %v2335_v57, %v2335_v57 }
0x1407   :  { %2339 = vadd.xlane.f32.xlu0 %v2338_v27 }
0x1408   :  { %v2341_v13 = vsel %vm300_vm1, %v2337_v28, 0.0 }
0x1409   :  { %2342 = vadd.xlane.f32.xlu1 %v2341_v13 }
0x1494   :  { %v2340_v17 = vpop.xlane.xlu0 %2339 }
0x1495   :  { %v2344_v18 = vmul.f32 0.03125, %v2340_v17 }
0x1496   :  { %v2343_v29 = vpop.xlane.xlu1 %2342 }
0x1497   :  { %v2346_v30 = vadd.f32 1e-06, %v2344_v18  ;;  %v2345_v6 = vmul.f32 0.03125, %v2343_v29 }
0x1499   :  { %2880 = vrsqrt.f32 %v2346_v30  ;;  %v2347_v31 = vadd.f32 1e-06, %v2345_v6 }
0x149b   :  { %2882 = vrsqrt.f32 %v2347_v31 }
0x14a3   :  { %v2881_v32 = vpop.eup %2880 }
0x14a4   :  { %v2350_v34 = vmul.f32 %v2881_v32, %v2334_v54 }
0x14a5   :  { %v2883_v10 = vpop.eup %2882 }
0x14a6   :  { %v2351_v36 = vmul.f32 %v2883_v10, %v2335_v57  ;;  %v2358_v37 = vmul.f32 %v2474_v33, %v2350_v34 }
0x14a8   :  { %v2359_v38 = vmul.f32 %v2474_v33, %v2351_v36  ;;  %v2366_v39 = vadd.f32 %v2475_v35, %v2358_v37 }
0x14aa   :  { %v2367_v40 = vadd.f32 %v2475_v35, %v2359_v38  ;;  %2368 = vst.msk [vmem:[#allocation29] sm:$0xff] %vm300_vm1, %v2366_v39 }
0x14ac   :  { %2369 = vst.msk [vmem:[#allocation29 + $0x8] sm:$0xff] %vm300_vm1, %v2367_v40 }
0x14ad   :  { %3271 = shalt.err (!%p3268_p0)
}
0x14ae   :  { %s3938_s9 = sld [smem:[#allocation42_spill]] }
0x14b4   :  { %s3272_s17 = scalar_lea.hbm %s3938_s9, 256 }
0x14b5   :  { %p3273_p1 = scmp.ne.s32.totalorder %s3938_s9, %s3272_s17  ;;  %p3276_p2 = scmp.lt.u32.totalorder %s3272_s17, %s3938_s9 }
0x14b7   :  { %p3278_p3 = pnand %p3276_p2, %p3273_p1 }
0x14b9   :  { %3281 = shalt.err (!%p3278_p3)
}
0x14ba   :  { %2381 = dma.vmem_to_hbm [thread:$0]  %s2376_s10, 256, %s3938_s9, [#allocation4], %s3315_s15, %s3315_s15, %s3316_s5  }
0x14bb   :  { %3300 = dma.done.wait [#allocation4], 256  }
0x14bc   :  { %3301 = vsyncadd [#allocation4], 4294967040 }
0x14bd   :  { %2385 = vsyncpa [#allocation3], 1 }
0x14be   :  { %2386 = vsyncpa [#allocation6], 1 }
0x14bf   :  { %2387 = vsyncpa [#allocation9], 1 }
0x14c0   :  { %2388 = vsyncpa [#allocation12], 1 }
0x14c1   :  { %2389 = vsyncpa [#allocation15], 1 }
0x14c2   :  { %2390 = vsyncpa [#allocation18], 1 }
0x14c3   :  { %2391 = vsyncpa [#allocation21], 1 }
0x14c4   :  { %2392 = vsyncpa [#allocation24], 1 }
0x14c5   :  { %2393 = vsyncpa [#allocation27], 1 }
0x14c6   :  { %2394 = vsyncpa [#allocation4], 1 }

</bundles_post_ra>
